<compile_context>
chip_gen: v5e
topology: v5e:2x2
jax: 0.10.0
libtpu: 0.0.40
codegen_flags: <defaults>
</compile_context>

<pallas_src>
import jax
import jax.numpy as jnp
from jax.experimental import pallas as pl
from jax.experimental.pallas import tpu as pltpu

BAR_X = 4.0  # Bar(4.0)
BAZ_X = 2.0  # Baz(2.0)


def _foo_kernel(a_ref, b_ref, o_ref):
    # Load in native dtype, compute in f32 registers, store in output dtype.
    a = a_ref[...].astype(jnp.float32)
    b = b_ref[...].astype(jnp.float32)
    bar_out = a * b + jnp.float32(BAR_X)       # Bar.forward
    out = bar_out + b * jnp.float32(BAZ_X)     # Baz.forward
    o_ref[...] = out.astype(o_ref.dtype)


def _round_up(x, m):
    return ((x + m - 1) // m) * m


def _choose_layout(n, elem_bytes, max_tile_bytes, sub):
    """Pick a lane-dense (R, C) slab and a row-tile TR for n elements.

    Returns (R, C, TR) or None (caller falls back to jnp).  TR is a multiple
    of `sub` (the dtype's sublane granularity); the grid is pl.cdiv(R, TR)
    with a masked partial last block, so R need not be a multiple of TR.
    """
    chosen = None
    # First pass: prefer a lane width C that also makes R sublane-aligned.
    for require_aligned in (True, False):
        for c in (1024, 512, 256, 128):
            if n % c:
                continue
            r = n // c
            if require_aligned and (r % sub):
                continue
            chosen = (r, c)
            break
        if chosen is not None:
            break
    if chosen is None:
        return None  # not 128-lane tileable -> jnp fallback
    R, C = chosen
    if R < sub:
        # Single full-extent block (legal: block == full array dims); tiny.
        return R, C, R

    # Rows per tile from the byte budget, rounded down to the sublane tile.
    bytes_per_row = C * elem_bytes
    rows_budget = max(sub, (max_tile_bytes // bytes_per_row) // sub * sub)
    TR = min(rows_budget, _round_up(R, sub))

    # Guarantee >= 2 grid steps when possible: v7x megacore sharding needs it
    # and it restores DMA/compute overlap for mid-sized single-tile inputs.
    if TR >= R and R >= 2 * sub:
        TR = _round_up(-(-R // 2), sub)
    return R, C, TR


def foo_forward(a, b, *, max_tile_bytes=2 << 20, min_bytes=512 << 10):
    """Foo.forward(a, b) == (a.reshape(1,-1) * b.reshape(1,-1) + 4.0) + b * 2.0."""
    n = a.size
    out_dtype = jnp.promote_types(a.dtype, b.dtype)
    if not jnp.issubdtype(out_dtype, jnp.floating):
        out_dtype = jnp.float32

    a_bytes = jnp.dtype(a.dtype).itemsize
    b_bytes = jnp.dtype(b.dtype).itemsize
    o_bytes = jnp.dtype(out_dtype).itemsize

    # Kernel path only when b corresponds element-for-element with a.reshape(1,-1).
    elementwise = (
        b.size == n and jnp.broadcast_shapes((1, n), jnp.shape(b)) == (1, n)
    )

    layout = None
    if elementwise and n * max(a_bytes, b_bytes) >= min_bytes:
        elem_bytes = max(a_bytes, b_bytes, o_bytes)        # widest operand sizes the tile
        sub = max(8, 32 // min(a_bytes, b_bytes, o_bytes))  # 8 f32 / 16 bf16 / 32 int8
        layout = _choose_layout(n, elem_bytes, max_tile_bytes, sub)

    if layout is None:
        # Tiny / non-128-aligned / general-broadcast case: plain XLA fusion
        # beats a Pallas launch (fixed per-step overhead dwarfs 3 flops/elem).
        bar_out = a.reshape(1, -1) * b.reshape(1, -1) + BAR_X
        return (bar_out + b * BAZ_X).astype(out_dtype)

    R, C, TR = layout
    a2 = a.reshape(R, C)   # no dtype cast in the wrapper (avoids an extra HBM pass)
    b2 = b.reshape(R, C)

    out = pl.pallas_call(
        _foo_kernel,
        out_shape=jax.ShapeDtypeStruct((R, C), out_dtype),
        grid=(pl.cdiv(R, TR),),
        in_specs=[
            pl.BlockSpec((TR, C), lambda i: (i, 0)),
            pl.BlockSpec((TR, C), lambda i: (i, 0)),
        ],
        out_specs=pl.BlockSpec((TR, C), lambda i: (i, 0)),
        compiler_params=pltpu.CompilerParams(
            dimension_semantics=("parallel",),
        ),
        cost_estimate=pl.CostEstimate(
            flops=3 * n,
            transcendentals=0,
            bytes_accessed=n * (a_bytes + b_bytes + o_bytes),
        ),
    )(a2, b2)

    # PyTorch result shape for 1-D / (1, N) b is (1, N).
    return out.reshape(1, n)


def _ref(a, b):
    return (a.reshape(1, -1) * b.reshape(1, -1) + BAR_X) + b.reshape(1, -1) * BAZ_X


if __name__ == "__main__":
    key = jax.random.PRNGKey(0)
    k1, k2, k3, k4, k5, k6, k7, k8 = jax.random.split(key, 8)

    # --- Case 1: default settings, kernel path (>= min_bytes gate), f32.
    a1 = jax.random.normal(k1, (256, 1024), dtype=jnp.float32)
    b1 = jax.random.normal(k2, (256 * 1024,), dtype=jnp.float32)
    out1 = jax.block_until_ready(foo_forward(a1, b1))
    ref1 = _ref(a1, b1)
    assert out1.shape == (1, 256 * 1024) and out1.dtype == ref1.dtype
    assert jnp.allclose(out1, ref1, atol=1e-5), "case 1 mismatch"

    # --- Case 2: small aligned input, forced kernel path with small tiles
    #             (multi-step grid: R=64, C=512, TR=32 -> grid=(2,)).
    a2 = jax.random.normal(k3, (64, 512), dtype=jnp.float32)
    b2 = jax.random.normal(k4, (64 * 512,), dtype=jnp.float32)
    out2 = jax.block_until_ready(
        foo_forward(a2, b2, max_tile_bytes=64 * 1024, min_bytes=0))
    assert jnp.allclose(out2, _ref(a2, b2), atol=1e-5), "case 2 mismatch"
    # Same input with default gate -> jnp fallback path; must agree.
    out2f = jax.block_until_ready(foo_forward(a2, b2))
    assert jnp.allclose(out2f, _ref(a2, b2), atol=1e-5), "case 2 fallback mismatch"

    # --- Case 3: ragged row count (R=25 not a multiple of 8) -> cdiv grid
    #             with a masked partial last block.
    a3 = jax.random.normal(k5, (25 * 512,), dtype=jnp.float32)
    b3 = jax.random.normal(k6, (1, 25 * 512), dtype=jnp.float32)
    out3 = jax.block_until_ready(foo_forward(a3, b3, min_bytes=0))
    assert jnp.allclose(out3, _ref(a3, b3), atol=1e-5), "case 3 mismatch"

    # --- Case 4: bf16 inputs (sublane granularity 16, dtype-aware tile size).
    a4 = jax.random.normal(k7, (512, 1024), dtype=jnp.bfloat16)
    b4 = jax.random.normal(k8, (512 * 1024,), dtype=jnp.bfloat16)
    out4 = jax.block_until_ready(foo_forward(a4, b4))
    ref4 = _ref(a4.astype(jnp.float32), b4.astype(jnp.float32))
    assert out4.dtype == jnp.bfloat16
    assert jnp.allclose(out4.astype(jnp.float32), ref4, atol=3e-2, rtol=3e-2), \
        "case 4 mismatch"

    print("KERNEL_OK")
</pallas_src>

<mosaic_0001>
module attributes {stable_mosaic.version = 11 : i64} {
  func.func @_foo_kernel(%arg0: i32, %arg1: memref<128x1024xf32, #tpu.memory_space<vmem>>, %arg2: memref<128x1024xf32, #tpu.memory_space<vmem>>, %arg3: memref<128x1024xf32, #tpu.memory_space<vmem>>) attributes {dimension_semantics = [#tpu.dimension_semantics<parallel>], iteration_bounds = array<i64: 2>, scalar_prefetch = 0 : i64, scratch_operands = 0 : i64, tpu.core_type = #tpu.core_type<tc>, window_params = [{transform_indices = @transform_0, window_bounds = array<i64: 128, 1024>}, {transform_indices = @transform_1, window_bounds = array<i64: 128, 1024>}, {transform_indices = @transform_2, window_bounds = array<i64: 128, 1024>}]} {
    %c0 = arith.constant 0 : index
    %c0_0 = arith.constant 0 : index
    %0 = vector.load %arg1[%c0, %c0_0] : memref<128x1024xf32, #tpu.memory_space<vmem>>, vector<128x1024xf32>
    %c0_1 = arith.constant 0 : index
    %c0_2 = arith.constant 0 : index
    %1 = vector.load %arg2[%c0_1, %c0_2] : memref<128x1024xf32, #tpu.memory_space<vmem>>, vector<128x1024xf32>
    %2 = arith.mulf %0, %1 : vector<128x1024xf32>
    %cst = arith.constant 4.000000e+00 : f32
    %3 = vector.broadcast %cst : f32 to vector<128x1024xf32>
    %4 = arith.addf %2, %3 : vector<128x1024xf32>
    %cst_3 = arith.constant 2.000000e+00 : f32
    %5 = vector.broadcast %cst_3 : f32 to vector<128x1024xf32>
    %6 = arith.mulf %1, %5 : vector<128x1024xf32>
    %7 = arith.addf %4, %6 : vector<128x1024xf32>
    %c0_4 = arith.constant 0 : index
    %c0_5 = arith.constant 0 : index
    %8 = vector.load %arg3[%c0_4, %c0_5] : memref<128x1024xf32, #tpu.memory_space<vmem>>, vector<128x1024xf32>
    tpu.vector_store %arg3[%c0_4, %c0_5], %7 {strides = array<i32>} : memref<128x1024xf32, #tpu.memory_space<vmem>>, vector<128x1024xf32>,
    return
  }
  func.func @transform_0(%arg0: i32) -> (i32, i32) {
    %c0_i32 = arith.constant 0 : i32
    %c0_i32_0 = arith.constant 0 : i32
    return %arg0, %c0_i32 : i32, i32
  }
  func.func @transform_1(%arg0: i32) -> (i32, i32) {
    %c0_i32 = arith.constant 0 : i32
    %c0_i32_0 = arith.constant 0 : i32
    return %arg0, %c0_i32 : i32, i32
  }
  func.func @transform_2(%arg0: i32) -> (i32, i32) {
    %c0_i32 = arith.constant 0 : i32
    %c0_i32_0 = arith.constant 0 : i32
    return %arg0, %c0_i32 : i32, i32
  }
}

</mosaic_0001>

<bundles_post_ra>
// kernel: tpu_custom_call.1
= control target key start
LH: loop header
LB: loop body
LE: loop exit
PB: predicated region body
PF: predicated region fallthrough
CT: control target
= control target key end

     0   :  { %7 = vsyncpa [#allocation3], 0  ;;  %s2017_s0 = inlined_call_operand.hbm [shape: f32[256,1024], index: 0, kind: input, shape index: {}]   ;;  %s2018_s1 = inlined_call_operand.hbm [shape: f32[256,1024], index: 1, kind: input, shape index: {}]   ;;  %s2019_s2 = inlined_call_operand.hbm [shape: f32[256,1024], index: 2, kind: output, shape index: {}]  }
   0x1   :  { %9 = vsyncpa [#allocation3 + $0x1], 0 }
   0x2   :  { %10 = vsyncpa [#allocation6], 0 }
   0x3   :  { %12 = vsyncpa [#allocation6 + $0x1], 0 }
   0x4   :  { %13 = vsyncpa [#allocation4], 0 }
   0x5   :  { %15 = vsyncpa [#allocation4 + $0x1], 0  ;;  %s1453_s9 = smov 0   ;;  %s1455_s10 = smov 0  }
   0x6   :  { %s1457_s11 = smov 0   ;;  %s1459_s12 = smov 0  }
   0x7 LB: > { %s1474_s13 = sadd.s32 4294967295, %s1432_s12   ;;  %s1220_s14 = sadd.s32 4294967294, %s1432_s12   ;;  %s1432_s12 = sphi %s1459_s12, %s2030_s12   ;;  %s1428_s11 = sphi %s1457_s11, %s2029_s11   ;;  %s1424_s10 = sphi %s1455_s10, %s2028_s10   ;;  %s1420_s9 = sphi %s1453_s9, %s2027_s9  }
   0x8   : > { %s1478_s15 = sadd.s32 1, %s1432_s12   ;;  %s28_s16 = sadd.s32 1, %s1428_s11 }
   0x9   : > { %s25_s17 = ssub.s32 %s1432_s12, %s1478_s15  ;;  %p35_p0 = scmp.ne.s32.totalorder %s1428_s11, %s1424_s10 }
   0xa   : > { %p26_p1 = scmp.eq.s32.totalorder %s25_s17, 0  ;;  %p36_p2 = scmp.eq.s32.totalorder %s1432_s12, 0 }
   0xb   : > { %p41_p3 = scmp.ne.s32.totalorder %s1424_s10, %s1420_s9  ;;  %p42_p4 = scmp.eq.s32.totalorder %s1474_s13, 0 }
   0xc   : > { %s1490_s18 = scalar_select %p26_p1, %s1428_s11, %s28_s16  }
   0xd   : > { %p1492_p5 = por %p36_p2, %p35_p0  ;;  %p1496_p6 = por %p42_p4, %p41_p3 }
   0xe   : > { %p91_p7 = scmp.eq.s32.totalorder %s1474_s13, 1  ;;  %p97_p8 = scmp.eq.s32.totalorder %s1220_s14, 1 }
   0xf   : > { %p1264_p10 = scmp.lt.s32.totalorder %s1432_s12, 2  ;;  %s1512_s23 = sand.u32 1, %s1428_s11  }
  0x10   : > { %p1503_p11 = por %p91_p7, %p35_p0  ;;  %p1507_p12 = por %p97_p8, %p41_p3 }
  0x11   : > { %s1242_s24 = sshll.u32 %s1432_s12, 10  ;;  %s1223_s25 = sshll.u32 %s1512_s23, 10 }
  0x12   : > { %s127_s28 = scalar_lea.hbm %s2017_s0, %s1242_s24  ;;  %s121_s30 = scalar_lea.vmem [#allocation2], %s1223_s25 }
  0x13   : > { %s128_s29 = sshll.u32 %s127_s28, 4  ;;  %s130_s3 = sshll.u32 %s121_s30, 4  ;;  %s129_s29 = int_to_ptr.hbm [resolvable:$true] %s128_s29  ;;  %s131_s3 = int_to_ptr.vmem [resolvable:$true] %s130_s3 }
  0x14   : > { %p1525_p13 = pnand %p1264_p10, %p1492_p5  ;;  %p1231_p0 = scmp.ge.s32.totalorder %s1432_s12, 1 }
  0x15   : > { %p161_p1 = scmp.lt.s32.totalorder %s1432_s12, 3  ;;  %s118_s5 = scalar_lea.sflag [#allocation3], %s1512_s23 }
  0x16   : > { %s1302_s6 = sshra.s32 %s129_s29, 4  ;;  %p1306_p3 = pneg %p1525_p13  ;;  %s1303_s6 = int_to_ptr.hbm [resolvable:$true] %s1302_s6 }
  0x17   : > { %s1304_s7 = scalar_lea.hbm %s1303_s6, 1024  ;;  %s1309_s16 = scalar_lea.hbm %s2017_s0, 2048 }
  0x18   : > { %p1305_p2 = scmp.ne.s32.totalorder %s1303_s6, %s1304_s7  ;;  %p1310_p5 = scmp.lt.s32.totalorder %s1303_s6, %s2017_s0 }
  0x19   : > { %p1311_p8 = scmp.lt.s32.totalorder %s1309_s16, %s1304_s7 }
  0x1a   : > { %p1307_p4 = pnand %p1306_p3, %p1305_p2 }
  0x1b   : > { %p1312_p10 = por %p1311_p8, %p1310_p5 }
  0x1c   : > { %p1308_p7 = pneg %p1307_p4 }
  0x1e   : > { %p1313_p9 = pnand %p1312_p10, %p1308_p7 }
  0x20   : > { %1316 = shalt.err (!%p1313_p9)
}
  0x21   : > { %s1434_s26 = smov 1024   ;;  %s1435_s27 = smov 64  }
  0x22   : > { %1256 = dma.hbm_to_vmem [thread:$0]  (!%p1525_p13), %s129_s29, 16384, %s131_s3, %s118_s5, %s1434_s26, %s1434_s26, %s1435_s27  }
  0x23   : > { %p1549_p2 = pnand %p1231_p0, %p161_p1  ;;  %s150_s7 = scalar_lea.hbm %s2018_s1, %s1242_s24 }
  0x24   : > { %s151_s8 = sshll.u32 %s150_s7, 4  ;;  %s144_s14 = scalar_lea.vmem [#allocation5], %s1223_s25  ;;  %s152_s8 = int_to_ptr.hbm [resolvable:$true] %s151_s8 }
  0x25   : > { %s153_s16 = sshll.u32 %s144_s14, 4  ;;  %s141_s17 = scalar_lea.sflag [#allocation6], %s1512_s23  ;;  %s154_s16 = int_to_ptr.vmem [resolvable:$true] %s153_s16 }
  0x26   : > { %s1332_s19 = sshra.s32 %s152_s8, 4  ;;  %s1339_s30 = scalar_lea.hbm %s2018_s1, 2048  ;;  %s1333_s19 = int_to_ptr.hbm [resolvable:$true] %s1332_s19 }
  0x27   : > { %s1334_s29 = scalar_lea.hbm %s1333_s19, 1024  ;;  %p1340_p4 = scmp.lt.s32.totalorder %s1333_s19, %s2018_s1 }
  0x28   : > { %p1335_p9 = scmp.ne.s32.totalorder %s1333_s19, %s1334_s29  ;;  %p1341_p7 = scmp.lt.s32.totalorder %s1339_s30, %s1334_s29 }
  0x2a   : > { %p1337_p0 = pnand %p1335_p9, %p1306_p3  ;;  %p1342_p5 = por %p1341_p7, %p1340_p4 }
  0x2c   : > { %p1338_p1 = pneg %p1337_p0 }
  0x2e   : > { %p1343_p8 = pnand %p1342_p5, %p1338_p1 }
  0x30   : > { %1346 = shalt.err (!%p1343_p8)
}
  0x31   : > { %1259 = dma.hbm_to_vmem [thread:$0]  (!%p1525_p13), %s152_s8, 16384, %s154_s16, %s141_s17, %s1434_s26, %s1434_s26, %s1435_s27  }
  0x32   : > { %165 = sbr.rel (%p1549_p2) target bundleno = 197 (0xc5), region = 28  ;;  %s1575_s23 = sand.u32 (!%p1549_p2), 1, %s1424_s10  }
  0x33   : > { %s1578_s25 = sshll.u32 (!%p1549_p2), %s1575_s23, 10  ;;  %s168_s7 = scalar_lea.sflag (!%p1549_p2), [#allocation3], %s1575_s23 }
  0x34   : > { %s1582_s14 = scalar_lea.vmem (!%p1549_p2), [#allocation2], %s1578_s25 }
  0x37   : > { %1407 = dma.done.wait (%p1496_p6), %s168_s7, 16384  }
  0x38   : > { %1409 = vsyncadd (%p1496_p6), %s168_s7, 4294950912  ;;  %s178_s4 = scalar_lea.sflag [#allocation6], %s1575_s23  ;;  %s1590_s26 = scalar_lea.vmem [#allocation5], %s1578_s25 }
  0x39   : > { %1411 = dma.done.wait (%p1496_p6), %s178_s4, 16384  }
  0x3a   : > { %1413 = vsyncadd (%p1496_p6), %s178_s4, 4294950912  ;;  %v211_v0 = vld [vmem:[%s1582_s14] sm:$0xff]  ;;  %v212_v2 = vld [vmem:[%s1582_s14 + $0x8] sm:$0xff]  ;;  %s1617_s20 = scalar_lea.vmem [#allocation7], %s1578_s25  ;;  %s1246_s27 = sshll.u32 %s1474_s13, 10 }
  0x3b   : > { %v339_v1 = vld [vmem:[%s1590_s26] sm:$0xff]  ;;  %v340_v5 = vld [vmem:[%s1590_s26 + $0x8] sm:$0xff]  ;;  %v213_v6 = vld [vmem:[%s1582_s14 + $0x10] sm:$0xff]  ;;  %s1120_s8 = scalar_lea.hbm %s2019_s2, %s1246_s27  ;;  %s1121_s16 = sshll.u32 %s1617_s20, 4  ;;  %s1122_s16 = int_to_ptr.vmem [resolvable:$true] %s1121_s16 }
  0x3c   : > { %v467_v3 = vmul.f32 %v339_v1, %v211_v0  ;;  %v723_v4 = vmul.f32 2.0, %v339_v1  ;;  %v341_v7 = vld [vmem:[%s1590_s26 + $0x10] sm:$0xff]  ;;  %v468_v8 = vmul.f32 %v340_v5, %v212_v2  ;;  %v724_v9 = vmul.f32 2.0, %v340_v5  ;;  %v214_v12 = vld [vmem:[%s1582_s14 + $0x18] sm:$0xff]  ;;  %v215_v14 = vld [vmem:[%s1582_s14 + $0x20] sm:$0xff]  ;;  %s1123_s17 = sshll.u32 %s1120_s8, 4  ;;  %s1124_s17 = int_to_ptr.hbm [resolvable:$true] %s1123_s17 }
  0x3d   : > { %v469_v10 = vmul.f32 %v341_v7, %v213_v6  ;;  %v725_v11 = vmul.f32 2.0, %v341_v7  ;;  %v342_v13 = vld [vmem:[%s1590_s26 + $0x18] sm:$0xff]  ;;  %v343_v18 = vld [vmem:[%s1590_s26 + $0x20] sm:$0xff]  ;;  %v216_v19 = vld [vmem:[%s1582_s14 + $0x28] sm:$0xff]  ;;  %s1108_s19 = scalar_lea.sflag [#allocation4], %s1575_s23  ;;  %s1376_s29 = sshra.s32 %s1124_s17, 4  ;;  %s1377_s29 = int_to_ptr.hbm [resolvable:$true] %s1376_s29 }
  0x3e   : > { %v595_v15 = vadd.f32 4.0, %v467_v3  ;;  %v470_v16 = vmul.f32 %v342_v13, %v214_v12  ;;  %v726_v17 = vmul.f32 2.0, %v342_v13  ;;  %v344_v20 = vld [vmem:[%s1590_s26 + $0x28] sm:$0xff]  ;;  %v596_v21 = vadd.f32 4.0, %v468_v8  ;;  %v217_v25 = vld [vmem:[%s1582_s14 + $0x30] sm:$0xff]  ;;  %v218_v27 = vld [vmem:[%s1582_s14 + $0x38] sm:$0xff]  ;;  %p1383_p10 = scmp.lt.s32.totalorder %s1377_s29, %s2019_s2 }
  0x3f   : > { %v597_v22 = vadd.f32 4.0, %v469_v10  ;;  %v471_v23 = vmul.f32 %v343_v18, %v215_v14  ;;  %v727_v24 = vmul.f32 2.0, %v343_v18  ;;  %v345_v26 = vld [vmem:[%s1590_s26 + $0x30] sm:$0xff]  ;;  %v472_v30 = vmul.f32 %v344_v20, %v216_v19  ;;  %v346_v32 = vld [vmem:[%s1590_s26 + $0x38] sm:$0xff]  ;;  %v219_v33 = vld [vmem:[%s1582_s14 + $0x40] sm:$0xff]  ;;  %s1378_s3 = scalar_lea.hbm %s1377_s29, 1024 }
  0x40   : > { %v851_v28 = vadd.f32 %v723_v4, %v595_v15  ;;  %v598_v29 = vadd.f32 4.0, %v470_v16  ;;  %v728_v31 = vmul.f32 2.0, %v344_v20  ;;  %v347_v34 = vld [vmem:[%s1590_s26 + $0x40] sm:$0xff]  ;;  %v852_v35 = vadd.f32 %v724_v9, %v596_v21  ;;  %v220_v39 = vld [vmem:[%s1582_s14 + $0x48] sm:$0xff]  ;;  %v221_v45 = vld [vmem:[%s1582_s14 + $0x50] sm:$0xff]  ;;  %p1379_p6 = scmp.ne.s32.totalorder %s1377_s29, %s1378_s3  ;;  %s1382_s24 = scalar_lea.hbm %s2019_s2, 2048 }
  0x41   : > { %v853_v36 = vadd.f32 %v725_v11, %v597_v22  ;;  %v599_v37 = vadd.f32 4.0, %v471_v23  ;;  %v473_v38 = vmul.f32 %v345_v26, %v217_v25  ;;  %v348_v40 = vld [vmem:[%s1590_s26 + $0x48] sm:$0xff]  ;;  %v600_v42 = vadd.f32 4.0, %v472_v30  ;;  %v349_v46 = vld [vmem:[%s1590_s26 + $0x50] sm:$0xff]  ;;  %v222_v51 = vld [vmem:[%s1582_s14 + $0x58] sm:$0xff]  ;;  %p1384_p2 = scmp.lt.s32.totalorder %s1382_s24, %s1378_s3 }
  0x42   : > { %979 = vst [vmem:[%s1617_s20] sm:$0xff] %v851_v28  ;;  %v854_v41 = vadd.f32 %v726_v17, %v598_v29  ;;  %v729_v43 = vmul.f32 2.0, %v345_v26  ;;  %v474_v44 = vmul.f32 %v346_v32, %v218_v27  ;;  %v730_v49 = vmul.f32 2.0, %v346_v32  ;;  %v350_v52 = vld [vmem:[%s1590_s26 + $0x58] sm:$0xff]  ;;  %v223_v57 = vld [vmem:[%s1582_s14 + $0x60] sm:$0xff]  ;;  %v224_v63 = vld [vmem:[%s1582_s14 + $0x68] sm:$0xff]  ;;  %p1380_p13 = pnand %p1379_p6, %p1503_p11 }
  0x43   : > { %980 = vst [vmem:[%s1617_s20 + $0x8] sm:$0xff] %v852_v35  ;;  %v855_v47 = vadd.f32 %v727_v24, %v599_v37  ;;  %v601_v48 = vadd.f32 4.0, %v473_v38  ;;  %v475_v50 = vmul.f32 %v347_v34, %v219_v33  ;;  %v856_v53 = vadd.f32 %v728_v31, %v600_v42  ;;  %v351_v58 = vld [vmem:[%s1590_s26 + $0x60] sm:$0xff]  ;;  %v352_v0 = vld [vmem:[%s1590_s26 + $0x68] sm:$0xff]  ;;  %v225_v5 = vld [vmem:[%s1582_s14 + $0x70] sm:$0xff]  ;;  %p1385_p9 = por %p1384_p2, %p1383_p10 }
  0x44   : > { %981 = vst [vmem:[%s1617_s20 + $0x10] sm:$0xff] %v853_v36  ;;  %v602_v54 = vadd.f32 4.0, %v474_v44  ;;  %v731_v55 = vmul.f32 2.0, %v347_v34  ;;  %v476_v56 = vmul.f32 %v348_v40, %v220_v39  ;;  %v732_v61 = vmul.f32 2.0, %v348_v40  ;;  %v353_v6 = vld [vmem:[%s1590_s26 + $0x70] sm:$0xff]  ;;  %v226_v11 = vld [vmem:[%s1582_s14 + $0x78] sm:$0xff]  ;;  %p1381_p3 = pneg %p1380_p13 }
  0x45   : > { %982 = vst [vmem:[%s1617_s20 + $0x18] sm:$0xff] %v854_v41  ;;  %v857_v59 = vadd.f32 %v729_v43, %v601_v48  ;;  %v603_v60 = vadd.f32 4.0, %v475_v50  ;;  %v477_v62 = vmul.f32 %v349_v46, %v221_v45  ;;  %v733_v3 = vmul.f32 2.0, %v349_v46  ;;  %v354_v12 = vld [vmem:[%s1590_s26 + $0x78] sm:$0xff]  ;;  %v227_v17 = vld [vmem:[%s1582_s14 + $0x80] sm:$0xff]  ;;  %v228_v23 = vld [vmem:[%s1582_s14 + $0x88] sm:$0xff] }
  0x46   : > { %983 = vst [vmem:[%s1617_s20 + $0x20] sm:$0xff] %v855_v47  ;;  %v858_v1 = vadd.f32 %v730_v49, %v602_v54  ;;  %v604_v2 = vadd.f32 4.0, %v476_v56  ;;  %v478_v4 = vmul.f32 %v350_v52, %v222_v51  ;;  %v734_v9 = vmul.f32 2.0, %v350_v52  ;;  %v355_v18 = vld [vmem:[%s1590_s26 + $0x80] sm:$0xff]  ;;  %v356_v24 = vld [vmem:[%s1590_s26 + $0x88] sm:$0xff]  ;;  %v229_v29 = vld [vmem:[%s1582_s14 + $0x90] sm:$0xff]  ;;  %p1386_p0 = pnand %p1385_p9, %p1381_p3 }
  0x47   : > { %984 = vst [vmem:[%s1617_s20 + $0x28] sm:$0xff] %v856_v53  ;;  %v859_v7 = vadd.f32 %v731_v55, %v603_v60  ;;  %v605_v8 = vadd.f32 4.0, %v477_v62  ;;  %v479_v10 = vmul.f32 %v351_v58, %v223_v57  ;;  %v735_v15 = vmul.f32 2.0, %v351_v58  ;;  %v357_v30 = vld [vmem:[%s1590_s26 + $0x90] sm:$0xff]  ;;  %v230_v35 = vld [vmem:[%s1582_s14 + $0x98] sm:$0xff]  ;;  %v231_v41 = vld [vmem:[%s1582_s14 + $0xa0] sm:$0xff] }
  0x48   : > { %985 = vst [vmem:[%s1617_s20 + $0x30] sm:$0xff] %v857_v59  ;;  %v860_v13 = vadd.f32 %v732_v61, %v604_v2  ;;  %v606_v14 = vadd.f32 4.0, %v478_v4  ;;  %v480_v16 = vmul.f32 %v352_v0, %v224_v63  ;;  %v736_v21 = vmul.f32 2.0, %v352_v0  ;;  %v358_v36 = vld [vmem:[%s1590_s26 + $0x98] sm:$0xff]  ;;  %v359_v42 = vld [vmem:[%s1590_s26 + $0xa0] sm:$0xff]  ;;  %v232_v47 = vld [vmem:[%s1582_s14 + $0xa8] sm:$0xff] }
  0x49   : > { %986 = vst [vmem:[%s1617_s20 + $0x38] sm:$0xff] %v858_v1  ;;  %v861_v19 = vadd.f32 %v733_v3, %v605_v8  ;;  %v607_v20 = vadd.f32 4.0, %v479_v10  ;;  %v481_v22 = vmul.f32 %v353_v6, %v225_v5  ;;  %v737_v27 = vmul.f32 2.0, %v353_v6  ;;  %v360_v48 = vld [vmem:[%s1590_s26 + $0xa8] sm:$0xff]  ;;  %v233_v53 = vld [vmem:[%s1582_s14 + $0xb0] sm:$0xff]  ;;  %v234_v59 = vld [vmem:[%s1582_s14 + $0xb8] sm:$0xff] }
  0x4a   : > { %987 = vst [vmem:[%s1617_s20 + $0x40] sm:$0xff] %v859_v7  ;;  %v862_v25 = vadd.f32 %v734_v9, %v606_v14  ;;  %v608_v26 = vadd.f32 4.0, %v480_v16  ;;  %v482_v28 = vmul.f32 %v354_v12, %v226_v11  ;;  %v738_v33 = vmul.f32 2.0, %v354_v12  ;;  %v361_v54 = vld [vmem:[%s1590_s26 + $0xb0] sm:$0xff]  ;;  %v362_v60 = vld [vmem:[%s1590_s26 + $0xb8] sm:$0xff]  ;;  %v235_v1 = vld [vmem:[%s1582_s14 + $0xc0] sm:$0xff] }
  0x4b   : > { %988 = vst [vmem:[%s1617_s20 + $0x48] sm:$0xff] %v860_v13  ;;  %v863_v31 = vadd.f32 %v735_v15, %v607_v20  ;;  %v609_v32 = vadd.f32 4.0, %v481_v22  ;;  %v483_v34 = vmul.f32 %v355_v18, %v227_v17  ;;  %v739_v39 = vmul.f32 2.0, %v355_v18  ;;  %v363_v2 = vld [vmem:[%s1590_s26 + $0xc0] sm:$0xff]  ;;  %v236_v7 = vld [vmem:[%s1582_s14 + $0xc8] sm:$0xff]  ;;  %v237_v13 = vld [vmem:[%s1582_s14 + $0xd0] sm:$0xff] }
  0x4c   : > { %989 = vst [vmem:[%s1617_s20 + $0x50] sm:$0xff] %v861_v19  ;;  %v864_v37 = vadd.f32 %v736_v21, %v608_v26  ;;  %v610_v38 = vadd.f32 4.0, %v482_v28  ;;  %v484_v40 = vmul.f32 %v356_v24, %v228_v23  ;;  %v740_v45 = vmul.f32 2.0, %v356_v24  ;;  %v364_v8 = vld [vmem:[%s1590_s26 + $0xc8] sm:$0xff]  ;;  %v365_v14 = vld [vmem:[%s1590_s26 + $0xd0] sm:$0xff]  ;;  %v238_v19 = vld [vmem:[%s1582_s14 + $0xd8] sm:$0xff] }
  0x4d   : > { %990 = vst [vmem:[%s1617_s20 + $0x58] sm:$0xff] %v862_v25  ;;  %v865_v43 = vadd.f32 %v737_v27, %v609_v32  ;;  %v611_v44 = vadd.f32 4.0, %v483_v34  ;;  %v485_v46 = vmul.f32 %v357_v30, %v229_v29  ;;  %v741_v51 = vmul.f32 2.0, %v357_v30  ;;  %v366_v20 = vld [vmem:[%s1590_s26 + $0xd8] sm:$0xff]  ;;  %v239_v25 = vld [vmem:[%s1582_s14 + $0xe0] sm:$0xff]  ;;  %v368_v32 = vld [vmem:[%s1590_s26 + $0xe8] sm:$0xff] }
  0x4e   : > { %991 = vst [vmem:[%s1617_s20 + $0x60] sm:$0xff] %v863_v31  ;;  %v866_v49 = vadd.f32 %v738_v33, %v610_v38  ;;  %v612_v50 = vadd.f32 4.0, %v484_v40  ;;  %v486_v52 = vmul.f32 %v358_v36, %v230_v35  ;;  %v742_v57 = vmul.f32 2.0, %v358_v36  ;;  %v367_v26 = vld [vmem:[%s1590_s26 + $0xe0] sm:$0xff]  ;;  %v240_v31 = vld [vmem:[%s1582_s14 + $0xe8] sm:$0xff]  ;;  %v369_v38 = vld [vmem:[%s1590_s26 + $0xf0] sm:$0xff] }
  0x4f   : > { %992 = vst [vmem:[%s1617_s20 + $0x68] sm:$0xff] %v864_v37  ;;  %v867_v55 = vadd.f32 %v739_v39, %v611_v44  ;;  %v613_v56 = vadd.f32 4.0, %v485_v46  ;;  %v487_v58 = vmul.f32 %v359_v42, %v231_v41  ;;  %v743_v63 = vmul.f32 2.0, %v359_v42  ;;  %v241_v37 = vld [vmem:[%s1582_s14 + $0xf0] sm:$0xff]  ;;  %v370_v44 = vld [vmem:[%s1590_s26 + $0xf8] sm:$0xff] }
  0x50   : > { %993 = vst [vmem:[%s1617_s20 + $0x70] sm:$0xff] %v865_v43  ;;  %v868_v61 = vadd.f32 %v740_v45, %v612_v50  ;;  %v614_v62 = vadd.f32 4.0, %v486_v52  ;;  %v488_v0 = vmul.f32 %v360_v48, %v232_v47  ;;  %v744_v5 = vmul.f32 2.0, %v360_v48  ;;  %v242_v43 = vld [vmem:[%s1582_s14 + $0xf8] sm:$0xff]  ;;  %v371_v50 = vld [vmem:[%s1590_s26 + $0x100] sm:$0xff] }
  0x51   : > { %994 = vst [vmem:[%s1617_s20 + $0x78] sm:$0xff] %v866_v49  ;;  %v869_v3 = vadd.f32 %v741_v51, %v613_v56  ;;  %v615_v4 = vadd.f32 4.0, %v487_v58  ;;  %v489_v6 = vmul.f32 %v361_v54, %v233_v53  ;;  %v745_v11 = vmul.f32 2.0, %v361_v54  ;;  %v243_v49 = vld [vmem:[%s1582_s14 + $0x100] sm:$0xff]  ;;  %v372_v56 = vld [vmem:[%s1590_s26 + $0x108] sm:$0xff] }
  0x52   : > { %995 = vst [vmem:[%s1617_s20 + $0x80] sm:$0xff] %v867_v55  ;;  %v870_v9 = vadd.f32 %v742_v57, %v614_v62  ;;  %v616_v10 = vadd.f32 4.0, %v488_v0  ;;  %v490_v12 = vmul.f32 %v362_v60, %v234_v59  ;;  %v746_v17 = vmul.f32 2.0, %v362_v60  ;;  %v244_v55 = vld [vmem:[%s1582_s14 + $0x108] sm:$0xff]  ;;  %v373_v62 = vld [vmem:[%s1590_s26 + $0x110] sm:$0xff] }
  0x53   : > { %996 = vst [vmem:[%s1617_s20 + $0x88] sm:$0xff] %v868_v61  ;;  %v871_v15 = vadd.f32 %v743_v63, %v615_v4  ;;  %v617_v16 = vadd.f32 4.0, %v489_v6  ;;  %v491_v18 = vmul.f32 %v363_v2, %v235_v1  ;;  %v747_v23 = vmul.f32 2.0, %v363_v2  ;;  %v245_v61 = vld [vmem:[%s1582_s14 + $0x110] sm:$0xff]  ;;  %v374_v4 = vld [vmem:[%s1590_s26 + $0x118] sm:$0xff] }
  0x54   : > { %997 = vst [vmem:[%s1617_s20 + $0x90] sm:$0xff] %v869_v3  ;;  %v872_v21 = vadd.f32 %v744_v5, %v616_v10  ;;  %v618_v22 = vadd.f32 4.0, %v490_v12  ;;  %v492_v24 = vmul.f32 %v364_v8, %v236_v7  ;;  %v748_v29 = vmul.f32 2.0, %v364_v8  ;;  %v246_v3 = vld [vmem:[%s1582_s14 + $0x118] sm:$0xff]  ;;  %v375_v10 = vld [vmem:[%s1590_s26 + $0x120] sm:$0xff] }
  0x55   : > { %998 = vst [vmem:[%s1617_s20 + $0x98] sm:$0xff] %v870_v9  ;;  %v873_v27 = vadd.f32 %v745_v11, %v617_v16  ;;  %v619_v28 = vadd.f32 4.0, %v491_v18  ;;  %v493_v30 = vmul.f32 %v365_v14, %v237_v13  ;;  %v749_v35 = vmul.f32 2.0, %v365_v14  ;;  %v247_v9 = vld [vmem:[%s1582_s14 + $0x120] sm:$0xff]  ;;  %v376_v16 = vld [vmem:[%s1590_s26 + $0x128] sm:$0xff] }
  0x56   : > { %999 = vst [vmem:[%s1617_s20 + $0xa0] sm:$0xff] %v871_v15  ;;  %v874_v33 = vadd.f32 %v746_v17, %v618_v22  ;;  %v620_v34 = vadd.f32 4.0, %v492_v24  ;;  %v494_v36 = vmul.f32 %v366_v20, %v238_v19  ;;  %v750_v41 = vmul.f32 2.0, %v366_v20  ;;  %v248_v15 = vld [vmem:[%s1582_s14 + $0x128] sm:$0xff]  ;;  %v377_v22 = vld [vmem:[%s1590_s26 + $0x130] sm:$0xff] }
  0x57   : > { %1000 = vst [vmem:[%s1617_s20 + $0xa8] sm:$0xff] %v872_v21  ;;  %v875_v39 = vadd.f32 %v747_v23, %v619_v28  ;;  %v621_v40 = vadd.f32 4.0, %v493_v30  ;;  %v495_v42 = vmul.f32 %v367_v26, %v239_v25  ;;  %v751_v47 = vmul.f32 2.0, %v367_v26  ;;  %v249_v21 = vld [vmem:[%s1582_s14 + $0x130] sm:$0xff]  ;;  %v378_v28 = vld [vmem:[%s1590_s26 + $0x138] sm:$0xff] }
  0x58   : > { %1001 = vst [vmem:[%s1617_s20 + $0xb0] sm:$0xff] %v873_v27  ;;  %v876_v45 = vadd.f32 %v748_v29, %v620_v34  ;;  %v622_v46 = vadd.f32 4.0, %v494_v36  ;;  %v496_v48 = vmul.f32 %v368_v32, %v240_v31  ;;  %v752_v53 = vmul.f32 2.0, %v368_v32  ;;  %v250_v27 = vld [vmem:[%s1582_s14 + $0x138] sm:$0xff]  ;;  %v379_v34 = vld [vmem:[%s1590_s26 + $0x140] sm:$0xff] }
  0x59   : > { %1002 = vst [vmem:[%s1617_s20 + $0xb8] sm:$0xff] %v874_v33  ;;  %v877_v51 = vadd.f32 %v749_v35, %v621_v40  ;;  %v623_v52 = vadd.f32 4.0, %v495_v42  ;;  %v497_v54 = vmul.f32 %v369_v38, %v241_v37  ;;  %v753_v59 = vmul.f32 2.0, %v369_v38  ;;  %v251_v33 = vld [vmem:[%s1582_s14 + $0x140] sm:$0xff]  ;;  %v380_v40 = vld [vmem:[%s1590_s26 + $0x148] sm:$0xff] }
  0x5a   : > { %1003 = vst [vmem:[%s1617_s20 + $0xc0] sm:$0xff] %v875_v39  ;;  %v878_v57 = vadd.f32 %v750_v41, %v622_v46  ;;  %v624_v58 = vadd.f32 4.0, %v496_v48  ;;  %v498_v60 = vmul.f32 %v370_v44, %v242_v43  ;;  %v754_v1 = vmul.f32 2.0, %v370_v44  ;;  %v252_v39 = vld [vmem:[%s1582_s14 + $0x148] sm:$0xff]  ;;  %v381_v46 = vld [vmem:[%s1590_s26 + $0x150] sm:$0xff] }
  0x5b   : > { %1004 = vst [vmem:[%s1617_s20 + $0xc8] sm:$0xff] %v876_v45  ;;  %v879_v63 = vadd.f32 %v751_v47, %v623_v52  ;;  %v625_v0 = vadd.f32 4.0, %v497_v54  ;;  %v499_v2 = vmul.f32 %v371_v50, %v243_v49  ;;  %v755_v7 = vmul.f32 2.0, %v371_v50  ;;  %v253_v45 = vld [vmem:[%s1582_s14 + $0x150] sm:$0xff]  ;;  %v382_v52 = vld [vmem:[%s1590_s26 + $0x158] sm:$0xff] }
  0x5c   : > { %1005 = vst [vmem:[%s1617_s20 + $0xd0] sm:$0xff] %v877_v51  ;;  %v880_v5 = vadd.f32 %v752_v53, %v624_v58  ;;  %v626_v6 = vadd.f32 4.0, %v498_v60  ;;  %v500_v8 = vmul.f32 %v372_v56, %v244_v55  ;;  %v756_v13 = vmul.f32 2.0, %v372_v56  ;;  %v254_v51 = vld [vmem:[%s1582_s14 + $0x158] sm:$0xff]  ;;  %v383_v58 = vld [vmem:[%s1590_s26 + $0x160] sm:$0xff] }
  0x5d   : > { %1006 = vst [vmem:[%s1617_s20 + $0xd8] sm:$0xff] %v878_v57  ;;  %v881_v11 = vadd.f32 %v753_v59, %v625_v0  ;;  %v627_v12 = vadd.f32 4.0, %v499_v2  ;;  %v501_v14 = vmul.f32 %v373_v62, %v245_v61  ;;  %v757_v19 = vmul.f32 2.0, %v373_v62  ;;  %v255_v57 = vld [vmem:[%s1582_s14 + $0x160] sm:$0xff]  ;;  %v384_v0 = vld [vmem:[%s1590_s26 + $0x168] sm:$0xff] }
  0x5e   : > { %1007 = vst [vmem:[%s1617_s20 + $0xe0] sm:$0xff] %v879_v63  ;;  %v882_v17 = vadd.f32 %v754_v1, %v626_v6  ;;  %v628_v18 = vadd.f32 4.0, %v500_v8  ;;  %v502_v20 = vmul.f32 %v374_v4, %v246_v3  ;;  %v758_v25 = vmul.f32 2.0, %v374_v4  ;;  %v256_v63 = vld [vmem:[%s1582_s14 + $0x168] sm:$0xff]  ;;  %v385_v6 = vld [vmem:[%s1590_s26 + $0x170] sm:$0xff] }
  0x5f   : > { %1008 = vst [vmem:[%s1617_s20 + $0xe8] sm:$0xff] %v880_v5  ;;  %v883_v23 = vadd.f32 %v755_v7, %v627_v12  ;;  %v629_v24 = vadd.f32 4.0, %v501_v14  ;;  %v503_v26 = vmul.f32 %v375_v10, %v247_v9  ;;  %v759_v31 = vmul.f32 2.0, %v375_v10  ;;  %v257_v5 = vld [vmem:[%s1582_s14 + $0x170] sm:$0xff]  ;;  %v386_v12 = vld [vmem:[%s1590_s26 + $0x178] sm:$0xff] }
  0x60   : > { %1009 = vst [vmem:[%s1617_s20 + $0xf0] sm:$0xff] %v881_v11  ;;  %v884_v29 = vadd.f32 %v756_v13, %v628_v18  ;;  %v630_v30 = vadd.f32 4.0, %v502_v20  ;;  %v504_v32 = vmul.f32 %v376_v16, %v248_v15  ;;  %v760_v37 = vmul.f32 2.0, %v376_v16  ;;  %v258_v11 = vld [vmem:[%s1582_s14 + $0x178] sm:$0xff]  ;;  %v387_v18 = vld [vmem:[%s1590_s26 + $0x180] sm:$0xff] }
  0x61   : > { %1010 = vst [vmem:[%s1617_s20 + $0xf8] sm:$0xff] %v882_v17  ;;  %v885_v35 = vadd.f32 %v757_v19, %v629_v24  ;;  %v631_v36 = vadd.f32 4.0, %v503_v26  ;;  %v505_v38 = vmul.f32 %v377_v22, %v249_v21  ;;  %v761_v43 = vmul.f32 2.0, %v377_v22  ;;  %v259_v17 = vld [vmem:[%s1582_s14 + $0x180] sm:$0xff]  ;;  %v388_v24 = vld [vmem:[%s1590_s26 + $0x188] sm:$0xff] }
  0x62   : > { %1011 = vst [vmem:[%s1617_s20 + $0x100] sm:$0xff] %v883_v23  ;;  %v886_v41 = vadd.f32 %v758_v25, %v630_v30  ;;  %v632_v42 = vadd.f32 4.0, %v504_v32  ;;  %v506_v44 = vmul.f32 %v378_v28, %v250_v27  ;;  %v762_v49 = vmul.f32 2.0, %v378_v28  ;;  %v260_v23 = vld [vmem:[%s1582_s14 + $0x188] sm:$0xff]  ;;  %v389_v30 = vld [vmem:[%s1590_s26 + $0x190] sm:$0xff] }
  0x63   : > { %1012 = vst [vmem:[%s1617_s20 + $0x108] sm:$0xff] %v884_v29  ;;  %v887_v47 = vadd.f32 %v759_v31, %v631_v36  ;;  %v633_v48 = vadd.f32 4.0, %v505_v38  ;;  %v507_v50 = vmul.f32 %v379_v34, %v251_v33  ;;  %v763_v55 = vmul.f32 2.0, %v379_v34  ;;  %v261_v29 = vld [vmem:[%s1582_s14 + $0x190] sm:$0xff]  ;;  %v390_v36 = vld [vmem:[%s1590_s26 + $0x198] sm:$0xff] }
  0x64   : > { %1013 = vst [vmem:[%s1617_s20 + $0x110] sm:$0xff] %v885_v35  ;;  %v888_v53 = vadd.f32 %v760_v37, %v632_v42  ;;  %v634_v54 = vadd.f32 4.0, %v506_v44  ;;  %v508_v56 = vmul.f32 %v380_v40, %v252_v39  ;;  %v764_v61 = vmul.f32 2.0, %v380_v40  ;;  %v262_v35 = vld [vmem:[%s1582_s14 + $0x198] sm:$0xff]  ;;  %v391_v42 = vld [vmem:[%s1590_s26 + $0x1a0] sm:$0xff] }
  0x65   : > { %1014 = vst [vmem:[%s1617_s20 + $0x118] sm:$0xff] %v886_v41  ;;  %v889_v59 = vadd.f32 %v761_v43, %v633_v48  ;;  %v635_v60 = vadd.f32 4.0, %v507_v50  ;;  %v509_v62 = vmul.f32 %v381_v46, %v253_v45  ;;  %v765_v3 = vmul.f32 2.0, %v381_v46  ;;  %v263_v41 = vld [vmem:[%s1582_s14 + $0x1a0] sm:$0xff]  ;;  %v392_v48 = vld [vmem:[%s1590_s26 + $0x1a8] sm:$0xff] }
  0x66   : > { %1015 = vst [vmem:[%s1617_s20 + $0x120] sm:$0xff] %v887_v47  ;;  %v890_v1 = vadd.f32 %v762_v49, %v634_v54  ;;  %v636_v2 = vadd.f32 4.0, %v508_v56  ;;  %v510_v4 = vmul.f32 %v382_v52, %v254_v51  ;;  %v766_v9 = vmul.f32 2.0, %v382_v52  ;;  %v264_v47 = vld [vmem:[%s1582_s14 + $0x1a8] sm:$0xff]  ;;  %v393_v54 = vld [vmem:[%s1590_s26 + $0x1b0] sm:$0xff] }
  0x67   : > { %1016 = vst [vmem:[%s1617_s20 + $0x128] sm:$0xff] %v888_v53  ;;  %v891_v7 = vadd.f32 %v763_v55, %v635_v60  ;;  %v637_v8 = vadd.f32 4.0, %v509_v62  ;;  %v511_v10 = vmul.f32 %v383_v58, %v255_v57  ;;  %v767_v15 = vmul.f32 2.0, %v383_v58  ;;  %v265_v53 = vld [vmem:[%s1582_s14 + $0x1b0] sm:$0xff]  ;;  %v394_v60 = vld [vmem:[%s1590_s26 + $0x1b8] sm:$0xff] }
  0x68   : > { %1017 = vst [vmem:[%s1617_s20 + $0x130] sm:$0xff] %v889_v59  ;;  %v892_v13 = vadd.f32 %v764_v61, %v636_v2  ;;  %v638_v14 = vadd.f32 4.0, %v510_v4  ;;  %v512_v16 = vmul.f32 %v384_v0, %v256_v63  ;;  %v768_v21 = vmul.f32 2.0, %v384_v0  ;;  %v266_v59 = vld [vmem:[%s1582_s14 + $0x1b8] sm:$0xff]  ;;  %v395_v2 = vld [vmem:[%s1590_s26 + $0x1c0] sm:$0xff] }
  0x69   : > { %1018 = vst [vmem:[%s1617_s20 + $0x138] sm:$0xff] %v890_v1  ;;  %v893_v19 = vadd.f32 %v765_v3, %v637_v8  ;;  %v639_v20 = vadd.f32 4.0, %v511_v10  ;;  %v513_v22 = vmul.f32 %v385_v6, %v257_v5  ;;  %v769_v27 = vmul.f32 2.0, %v385_v6  ;;  %v267_v1 = vld [vmem:[%s1582_s14 + $0x1c0] sm:$0xff]  ;;  %v396_v8 = vld [vmem:[%s1590_s26 + $0x1c8] sm:$0xff] }
  0x6a   : > { %1019 = vst [vmem:[%s1617_s20 + $0x140] sm:$0xff] %v891_v7  ;;  %v894_v25 = vadd.f32 %v766_v9, %v638_v14  ;;  %v640_v26 = vadd.f32 4.0, %v512_v16  ;;  %v514_v28 = vmul.f32 %v386_v12, %v258_v11  ;;  %v770_v33 = vmul.f32 2.0, %v386_v12  ;;  %v268_v7 = vld [vmem:[%s1582_s14 + $0x1c8] sm:$0xff]  ;;  %v397_v14 = vld [vmem:[%s1590_s26 + $0x1d0] sm:$0xff] }
  0x6b   : > { %1020 = vst [vmem:[%s1617_s20 + $0x148] sm:$0xff] %v892_v13  ;;  %v895_v31 = vadd.f32 %v767_v15, %v639_v20  ;;  %v641_v32 = vadd.f32 4.0, %v513_v22  ;;  %v515_v34 = vmul.f32 %v387_v18, %v259_v17  ;;  %v771_v39 = vmul.f32 2.0, %v387_v18  ;;  %v269_v13 = vld [vmem:[%s1582_s14 + $0x1d0] sm:$0xff]  ;;  %v398_v20 = vld [vmem:[%s1590_s26 + $0x1d8] sm:$0xff] }
  0x6c   : > { %1021 = vst [vmem:[%s1617_s20 + $0x150] sm:$0xff] %v893_v19  ;;  %v896_v37 = vadd.f32 %v768_v21, %v640_v26  ;;  %v642_v38 = vadd.f32 4.0, %v514_v28  ;;  %v516_v40 = vmul.f32 %v388_v24, %v260_v23  ;;  %v772_v45 = vmul.f32 2.0, %v388_v24  ;;  %v270_v19 = vld [vmem:[%s1582_s14 + $0x1d8] sm:$0xff]  ;;  %v399_v26 = vld [vmem:[%s1590_s26 + $0x1e0] sm:$0xff] }
  0x6d   : > { %1022 = vst [vmem:[%s1617_s20 + $0x158] sm:$0xff] %v894_v25  ;;  %v897_v43 = vadd.f32 %v769_v27, %v641_v32  ;;  %v643_v44 = vadd.f32 4.0, %v515_v34  ;;  %v517_v46 = vmul.f32 %v389_v30, %v261_v29  ;;  %v773_v51 = vmul.f32 2.0, %v389_v30  ;;  %v271_v25 = vld [vmem:[%s1582_s14 + $0x1e0] sm:$0xff]  ;;  %v400_v32 = vld [vmem:[%s1590_s26 + $0x1e8] sm:$0xff] }
  0x6e   : > { %1023 = vst [vmem:[%s1617_s20 + $0x160] sm:$0xff] %v895_v31  ;;  %v898_v49 = vadd.f32 %v770_v33, %v642_v38  ;;  %v644_v50 = vadd.f32 4.0, %v516_v40  ;;  %v518_v52 = vmul.f32 %v390_v36, %v262_v35  ;;  %v774_v57 = vmul.f32 2.0, %v390_v36  ;;  %v272_v31 = vld [vmem:[%s1582_s14 + $0x1e8] sm:$0xff]  ;;  %v401_v38 = vld [vmem:[%s1590_s26 + $0x1f0] sm:$0xff] }
  0x6f   : > { %1024 = vst [vmem:[%s1617_s20 + $0x168] sm:$0xff] %v896_v37  ;;  %v899_v55 = vadd.f32 %v771_v39, %v643_v44  ;;  %v645_v56 = vadd.f32 4.0, %v517_v46  ;;  %v519_v58 = vmul.f32 %v391_v42, %v263_v41  ;;  %v775_v63 = vmul.f32 2.0, %v391_v42  ;;  %v273_v37 = vld [vmem:[%s1582_s14 + $0x1f0] sm:$0xff]  ;;  %v402_v44 = vld [vmem:[%s1590_s26 + $0x1f8] sm:$0xff] }
  0x70   : > { %1025 = vst [vmem:[%s1617_s20 + $0x170] sm:$0xff] %v897_v43  ;;  %v900_v61 = vadd.f32 %v772_v45, %v644_v50  ;;  %v646_v62 = vadd.f32 4.0, %v518_v52  ;;  %v520_v0 = vmul.f32 %v392_v48, %v264_v47  ;;  %v776_v5 = vmul.f32 2.0, %v392_v48  ;;  %v274_v43 = vld [vmem:[%s1582_s14 + $0x1f8] sm:$0xff]  ;;  %v403_v50 = vld [vmem:[%s1590_s26 + $0x200] sm:$0xff] }
  0x71   : > { %1026 = vst [vmem:[%s1617_s20 + $0x178] sm:$0xff] %v898_v49  ;;  %v901_v3 = vadd.f32 %v773_v51, %v645_v56  ;;  %v647_v4 = vadd.f32 4.0, %v519_v58  ;;  %v521_v6 = vmul.f32 %v393_v54, %v265_v53  ;;  %v777_v11 = vmul.f32 2.0, %v393_v54  ;;  %v275_v49 = vld [vmem:[%s1582_s14 + $0x200] sm:$0xff]  ;;  %v404_v56 = vld [vmem:[%s1590_s26 + $0x208] sm:$0xff] }
  0x72   : > { %1027 = vst [vmem:[%s1617_s20 + $0x180] sm:$0xff] %v899_v55  ;;  %v902_v9 = vadd.f32 %v774_v57, %v646_v62  ;;  %v648_v10 = vadd.f32 4.0, %v520_v0  ;;  %v522_v12 = vmul.f32 %v394_v60, %v266_v59  ;;  %v778_v17 = vmul.f32 2.0, %v394_v60  ;;  %v276_v55 = vld [vmem:[%s1582_s14 + $0x208] sm:$0xff]  ;;  %v405_v62 = vld [vmem:[%s1590_s26 + $0x210] sm:$0xff] }
  0x73   : > { %1028 = vst [vmem:[%s1617_s20 + $0x188] sm:$0xff] %v900_v61  ;;  %v903_v15 = vadd.f32 %v775_v63, %v647_v4  ;;  %v649_v16 = vadd.f32 4.0, %v521_v6  ;;  %v523_v18 = vmul.f32 %v395_v2, %v267_v1  ;;  %v779_v23 = vmul.f32 2.0, %v395_v2  ;;  %v277_v61 = vld [vmem:[%s1582_s14 + $0x210] sm:$0xff]  ;;  %v406_v4 = vld [vmem:[%s1590_s26 + $0x218] sm:$0xff] }
  0x74   : > { %1029 = vst [vmem:[%s1617_s20 + $0x190] sm:$0xff] %v901_v3  ;;  %v904_v21 = vadd.f32 %v776_v5, %v648_v10  ;;  %v650_v22 = vadd.f32 4.0, %v522_v12  ;;  %v524_v24 = vmul.f32 %v396_v8, %v268_v7  ;;  %v780_v29 = vmul.f32 2.0, %v396_v8  ;;  %v278_v3 = vld [vmem:[%s1582_s14 + $0x218] sm:$0xff]  ;;  %v407_v10 = vld [vmem:[%s1590_s26 + $0x220] sm:$0xff] }
  0x75   : > { %1030 = vst [vmem:[%s1617_s20 + $0x198] sm:$0xff] %v902_v9  ;;  %v905_v27 = vadd.f32 %v777_v11, %v649_v16  ;;  %v651_v28 = vadd.f32 4.0, %v523_v18  ;;  %v525_v30 = vmul.f32 %v397_v14, %v269_v13  ;;  %v781_v35 = vmul.f32 2.0, %v397_v14  ;;  %v279_v9 = vld [vmem:[%s1582_s14 + $0x220] sm:$0xff]  ;;  %v408_v16 = vld [vmem:[%s1590_s26 + $0x228] sm:$0xff] }
  0x76   : > { %1031 = vst [vmem:[%s1617_s20 + $0x1a0] sm:$0xff] %v903_v15  ;;  %v906_v33 = vadd.f32 %v778_v17, %v650_v22  ;;  %v652_v34 = vadd.f32 4.0, %v524_v24  ;;  %v526_v36 = vmul.f32 %v398_v20, %v270_v19  ;;  %v782_v41 = vmul.f32 2.0, %v398_v20  ;;  %v280_v15 = vld [vmem:[%s1582_s14 + $0x228] sm:$0xff]  ;;  %v409_v22 = vld [vmem:[%s1590_s26 + $0x230] sm:$0xff] }
  0x77   : > { %1032 = vst [vmem:[%s1617_s20 + $0x1a8] sm:$0xff] %v904_v21  ;;  %v907_v39 = vadd.f32 %v779_v23, %v651_v28  ;;  %v653_v40 = vadd.f32 4.0, %v525_v30  ;;  %v527_v42 = vmul.f32 %v399_v26, %v271_v25  ;;  %v783_v47 = vmul.f32 2.0, %v399_v26  ;;  %v281_v21 = vld [vmem:[%s1582_s14 + $0x230] sm:$0xff]  ;;  %v410_v28 = vld [vmem:[%s1590_s26 + $0x238] sm:$0xff] }
  0x78   : > { %1033 = vst [vmem:[%s1617_s20 + $0x1b0] sm:$0xff] %v905_v27  ;;  %v908_v45 = vadd.f32 %v780_v29, %v652_v34  ;;  %v654_v46 = vadd.f32 4.0, %v526_v36  ;;  %v528_v48 = vmul.f32 %v400_v32, %v272_v31  ;;  %v784_v53 = vmul.f32 2.0, %v400_v32  ;;  %v282_v27 = vld [vmem:[%s1582_s14 + $0x238] sm:$0xff]  ;;  %v411_v34 = vld [vmem:[%s1590_s26 + $0x240] sm:$0xff] }
  0x79   : > { %1034 = vst [vmem:[%s1617_s20 + $0x1b8] sm:$0xff] %v906_v33  ;;  %v909_v51 = vadd.f32 %v781_v35, %v653_v40  ;;  %v655_v52 = vadd.f32 4.0, %v527_v42  ;;  %v529_v54 = vmul.f32 %v401_v38, %v273_v37  ;;  %v785_v59 = vmul.f32 2.0, %v401_v38  ;;  %v283_v33 = vld [vmem:[%s1582_s14 + $0x240] sm:$0xff]  ;;  %v412_v40 = vld [vmem:[%s1590_s26 + $0x248] sm:$0xff] }
  0x7a   : > { %1035 = vst [vmem:[%s1617_s20 + $0x1c0] sm:$0xff] %v907_v39  ;;  %v910_v57 = vadd.f32 %v782_v41, %v654_v46  ;;  %v656_v58 = vadd.f32 4.0, %v528_v48  ;;  %v530_v60 = vmul.f32 %v402_v44, %v274_v43  ;;  %v786_v1 = vmul.f32 2.0, %v402_v44  ;;  %v284_v39 = vld [vmem:[%s1582_s14 + $0x248] sm:$0xff]  ;;  %v413_v46 = vld [vmem:[%s1590_s26 + $0x250] sm:$0xff] }
  0x7b   : > { %1036 = vst [vmem:[%s1617_s20 + $0x1c8] sm:$0xff] %v908_v45  ;;  %v911_v63 = vadd.f32 %v783_v47, %v655_v52  ;;  %v657_v0 = vadd.f32 4.0, %v529_v54  ;;  %v531_v2 = vmul.f32 %v403_v50, %v275_v49  ;;  %v787_v7 = vmul.f32 2.0, %v403_v50  ;;  %v285_v45 = vld [vmem:[%s1582_s14 + $0x250] sm:$0xff]  ;;  %v414_v52 = vld [vmem:[%s1590_s26 + $0x258] sm:$0xff] }
  0x7c   : > { %1037 = vst [vmem:[%s1617_s20 + $0x1d0] sm:$0xff] %v909_v51  ;;  %v912_v5 = vadd.f32 %v784_v53, %v656_v58  ;;  %v658_v6 = vadd.f32 4.0, %v530_v60  ;;  %v532_v8 = vmul.f32 %v404_v56, %v276_v55  ;;  %v788_v13 = vmul.f32 2.0, %v404_v56  ;;  %v286_v51 = vld [vmem:[%s1582_s14 + $0x258] sm:$0xff]  ;;  %v415_v58 = vld [vmem:[%s1590_s26 + $0x260] sm:$0xff] }
  0x7d   : > { %1038 = vst [vmem:[%s1617_s20 + $0x1d8] sm:$0xff] %v910_v57  ;;  %v913_v11 = vadd.f32 %v785_v59, %v657_v0  ;;  %v659_v12 = vadd.f32 4.0, %v531_v2  ;;  %v533_v14 = vmul.f32 %v405_v62, %v277_v61  ;;  %v789_v19 = vmul.f32 2.0, %v405_v62  ;;  %v287_v57 = vld [vmem:[%s1582_s14 + $0x260] sm:$0xff]  ;;  %v416_v0 = vld [vmem:[%s1590_s26 + $0x268] sm:$0xff] }
  0x7e   : > { %1039 = vst [vmem:[%s1617_s20 + $0x1e0] sm:$0xff] %v911_v63  ;;  %v914_v17 = vadd.f32 %v786_v1, %v658_v6  ;;  %v660_v18 = vadd.f32 4.0, %v532_v8  ;;  %v534_v20 = vmul.f32 %v406_v4, %v278_v3  ;;  %v790_v25 = vmul.f32 2.0, %v406_v4  ;;  %v288_v63 = vld [vmem:[%s1582_s14 + $0x268] sm:$0xff]  ;;  %v417_v6 = vld [vmem:[%s1590_s26 + $0x270] sm:$0xff] }
  0x7f   : > { %1040 = vst [vmem:[%s1617_s20 + $0x1e8] sm:$0xff] %v912_v5  ;;  %v915_v23 = vadd.f32 %v787_v7, %v659_v12  ;;  %v661_v24 = vadd.f32 4.0, %v533_v14  ;;  %v535_v26 = vmul.f32 %v407_v10, %v279_v9  ;;  %v791_v31 = vmul.f32 2.0, %v407_v10  ;;  %v289_v5 = vld [vmem:[%s1582_s14 + $0x270] sm:$0xff]  ;;  %v418_v12 = vld [vmem:[%s1590_s26 + $0x278] sm:$0xff] }
  0x80   : > { %1041 = vst [vmem:[%s1617_s20 + $0x1f0] sm:$0xff] %v913_v11  ;;  %v916_v29 = vadd.f32 %v788_v13, %v660_v18  ;;  %v662_v30 = vadd.f32 4.0, %v534_v20  ;;  %v536_v32 = vmul.f32 %v408_v16, %v280_v15  ;;  %v792_v37 = vmul.f32 2.0, %v408_v16  ;;  %v290_v11 = vld [vmem:[%s1582_s14 + $0x278] sm:$0xff]  ;;  %v419_v18 = vld [vmem:[%s1590_s26 + $0x280] sm:$0xff] }
  0x81   : > { %1042 = vst [vmem:[%s1617_s20 + $0x1f8] sm:$0xff] %v914_v17  ;;  %v917_v35 = vadd.f32 %v789_v19, %v661_v24  ;;  %v663_v36 = vadd.f32 4.0, %v535_v26  ;;  %v537_v38 = vmul.f32 %v409_v22, %v281_v21  ;;  %v793_v43 = vmul.f32 2.0, %v409_v22  ;;  %v291_v17 = vld [vmem:[%s1582_s14 + $0x280] sm:$0xff]  ;;  %v420_v24 = vld [vmem:[%s1590_s26 + $0x288] sm:$0xff] }
  0x82   : > { %1043 = vst [vmem:[%s1617_s20 + $0x200] sm:$0xff] %v915_v23  ;;  %v918_v41 = vadd.f32 %v790_v25, %v662_v30  ;;  %v664_v42 = vadd.f32 4.0, %v536_v32  ;;  %v538_v44 = vmul.f32 %v410_v28, %v282_v27  ;;  %v794_v49 = vmul.f32 2.0, %v410_v28  ;;  %v292_v23 = vld [vmem:[%s1582_s14 + $0x288] sm:$0xff]  ;;  %v421_v30 = vld [vmem:[%s1590_s26 + $0x290] sm:$0xff] }
  0x83   : > { %1044 = vst [vmem:[%s1617_s20 + $0x208] sm:$0xff] %v916_v29  ;;  %v919_v47 = vadd.f32 %v791_v31, %v663_v36  ;;  %v665_v48 = vadd.f32 4.0, %v537_v38  ;;  %v539_v50 = vmul.f32 %v411_v34, %v283_v33  ;;  %v795_v55 = vmul.f32 2.0, %v411_v34  ;;  %v293_v29 = vld [vmem:[%s1582_s14 + $0x290] sm:$0xff]  ;;  %v422_v36 = vld [vmem:[%s1590_s26 + $0x298] sm:$0xff] }
  0x84   : > { %1045 = vst [vmem:[%s1617_s20 + $0x210] sm:$0xff] %v917_v35  ;;  %v920_v53 = vadd.f32 %v792_v37, %v664_v42  ;;  %v666_v54 = vadd.f32 4.0, %v538_v44  ;;  %v540_v56 = vmul.f32 %v412_v40, %v284_v39  ;;  %v796_v61 = vmul.f32 2.0, %v412_v40  ;;  %v294_v35 = vld [vmem:[%s1582_s14 + $0x298] sm:$0xff]  ;;  %v423_v42 = vld [vmem:[%s1590_s26 + $0x2a0] sm:$0xff] }
  0x85   : > { %1046 = vst [vmem:[%s1617_s20 + $0x218] sm:$0xff] %v918_v41  ;;  %v921_v59 = vadd.f32 %v793_v43, %v665_v48  ;;  %v667_v60 = vadd.f32 4.0, %v539_v50  ;;  %v541_v62 = vmul.f32 %v413_v46, %v285_v45  ;;  %v797_v3 = vmul.f32 2.0, %v413_v46  ;;  %v295_v41 = vld [vmem:[%s1582_s14 + $0x2a0] sm:$0xff]  ;;  %v424_v48 = vld [vmem:[%s1590_s26 + $0x2a8] sm:$0xff] }
  0x86   : > { %1047 = vst [vmem:[%s1617_s20 + $0x220] sm:$0xff] %v919_v47  ;;  %v922_v1 = vadd.f32 %v794_v49, %v666_v54  ;;  %v668_v2 = vadd.f32 4.0, %v540_v56  ;;  %v542_v4 = vmul.f32 %v414_v52, %v286_v51  ;;  %v798_v9 = vmul.f32 2.0, %v414_v52  ;;  %v296_v47 = vld [vmem:[%s1582_s14 + $0x2a8] sm:$0xff]  ;;  %v425_v54 = vld [vmem:[%s1590_s26 + $0x2b0] sm:$0xff] }
  0x87   : > { %1048 = vst [vmem:[%s1617_s20 + $0x228] sm:$0xff] %v920_v53  ;;  %v923_v7 = vadd.f32 %v795_v55, %v667_v60  ;;  %v669_v8 = vadd.f32 4.0, %v541_v62  ;;  %v543_v10 = vmul.f32 %v415_v58, %v287_v57  ;;  %v799_v15 = vmul.f32 2.0, %v415_v58  ;;  %v297_v53 = vld [vmem:[%s1582_s14 + $0x2b0] sm:$0xff]  ;;  %v426_v60 = vld [vmem:[%s1590_s26 + $0x2b8] sm:$0xff] }
  0x88   : > { %1049 = vst [vmem:[%s1617_s20 + $0x230] sm:$0xff] %v921_v59  ;;  %v924_v13 = vadd.f32 %v796_v61, %v668_v2  ;;  %v670_v14 = vadd.f32 4.0, %v542_v4  ;;  %v544_v16 = vmul.f32 %v416_v0, %v288_v63  ;;  %v800_v21 = vmul.f32 2.0, %v416_v0  ;;  %v298_v59 = vld [vmem:[%s1582_s14 + $0x2b8] sm:$0xff]  ;;  %v427_v2 = vld [vmem:[%s1590_s26 + $0x2c0] sm:$0xff] }
  0x89   : > { %1050 = vst [vmem:[%s1617_s20 + $0x238] sm:$0xff] %v922_v1  ;;  %v925_v19 = vadd.f32 %v797_v3, %v669_v8  ;;  %v671_v20 = vadd.f32 4.0, %v543_v10  ;;  %v545_v22 = vmul.f32 %v417_v6, %v289_v5  ;;  %v801_v27 = vmul.f32 2.0, %v417_v6  ;;  %v299_v1 = vld [vmem:[%s1582_s14 + $0x2c0] sm:$0xff]  ;;  %v428_v8 = vld [vmem:[%s1590_s26 + $0x2c8] sm:$0xff] }
  0x8a   : > { %1051 = vst [vmem:[%s1617_s20 + $0x240] sm:$0xff] %v923_v7  ;;  %v926_v25 = vadd.f32 %v798_v9, %v670_v14  ;;  %v672_v26 = vadd.f32 4.0, %v544_v16  ;;  %v546_v28 = vmul.f32 %v418_v12, %v290_v11  ;;  %v802_v33 = vmul.f32 2.0, %v418_v12  ;;  %v300_v7 = vld [vmem:[%s1582_s14 + $0x2c8] sm:$0xff]  ;;  %v429_v14 = vld [vmem:[%s1590_s26 + $0x2d0] sm:$0xff] }
  0x8b   : > { %1052 = vst [vmem:[%s1617_s20 + $0x248] sm:$0xff] %v924_v13  ;;  %v927_v31 = vadd.f32 %v799_v15, %v671_v20  ;;  %v673_v32 = vadd.f32 4.0, %v545_v22  ;;  %v547_v34 = vmul.f32 %v419_v18, %v291_v17  ;;  %v803_v39 = vmul.f32 2.0, %v419_v18  ;;  %v301_v13 = vld [vmem:[%s1582_s14 + $0x2d0] sm:$0xff]  ;;  %v430_v20 = vld [vmem:[%s1590_s26 + $0x2d8] sm:$0xff] }
  0x8c   : > { %1053 = vst [vmem:[%s1617_s20 + $0x250] sm:$0xff] %v925_v19  ;;  %v928_v37 = vadd.f32 %v800_v21, %v672_v26  ;;  %v674_v38 = vadd.f32 4.0, %v546_v28  ;;  %v548_v40 = vmul.f32 %v420_v24, %v292_v23  ;;  %v804_v45 = vmul.f32 2.0, %v420_v24  ;;  %v302_v19 = vld [vmem:[%s1582_s14 + $0x2d8] sm:$0xff]  ;;  %v431_v26 = vld [vmem:[%s1590_s26 + $0x2e0] sm:$0xff] }
  0x8d   : > { %1054 = vst [vmem:[%s1617_s20 + $0x258] sm:$0xff] %v926_v25  ;;  %v929_v43 = vadd.f32 %v801_v27, %v673_v32  ;;  %v675_v44 = vadd.f32 4.0, %v547_v34  ;;  %v549_v46 = vmul.f32 %v421_v30, %v293_v29  ;;  %v805_v51 = vmul.f32 2.0, %v421_v30  ;;  %v303_v25 = vld [vmem:[%s1582_s14 + $0x2e0] sm:$0xff]  ;;  %v432_v32 = vld [vmem:[%s1590_s26 + $0x2e8] sm:$0xff] }
  0x8e   : > { %1055 = vst [vmem:[%s1617_s20 + $0x260] sm:$0xff] %v927_v31  ;;  %v930_v49 = vadd.f32 %v802_v33, %v674_v38  ;;  %v676_v50 = vadd.f32 4.0, %v548_v40  ;;  %v550_v52 = vmul.f32 %v422_v36, %v294_v35  ;;  %v806_v57 = vmul.f32 2.0, %v422_v36  ;;  %v304_v31 = vld [vmem:[%s1582_s14 + $0x2e8] sm:$0xff]  ;;  %v433_v38 = vld [vmem:[%s1590_s26 + $0x2f0] sm:$0xff] }
  0x8f   : > { %1056 = vst [vmem:[%s1617_s20 + $0x268] sm:$0xff] %v928_v37  ;;  %v931_v55 = vadd.f32 %v803_v39, %v675_v44  ;;  %v677_v56 = vadd.f32 4.0, %v549_v46  ;;  %v551_v58 = vmul.f32 %v423_v42, %v295_v41  ;;  %v807_v63 = vmul.f32 2.0, %v423_v42  ;;  %v305_v37 = vld [vmem:[%s1582_s14 + $0x2f0] sm:$0xff]  ;;  %v434_v44 = vld [vmem:[%s1590_s26 + $0x2f8] sm:$0xff] }
  0x90   : > { %1057 = vst [vmem:[%s1617_s20 + $0x270] sm:$0xff] %v929_v43  ;;  %v932_v61 = vadd.f32 %v804_v45, %v676_v50  ;;  %v678_v62 = vadd.f32 4.0, %v550_v52  ;;  %v552_v0 = vmul.f32 %v424_v48, %v296_v47  ;;  %v808_v5 = vmul.f32 2.0, %v424_v48  ;;  %v306_v43 = vld [vmem:[%s1582_s14 + $0x2f8] sm:$0xff]  ;;  %v435_v50 = vld [vmem:[%s1590_s26 + $0x300] sm:$0xff] }
  0x91   : > { %1058 = vst [vmem:[%s1617_s20 + $0x278] sm:$0xff] %v930_v49  ;;  %v933_v3 = vadd.f32 %v805_v51, %v677_v56  ;;  %v679_v4 = vadd.f32 4.0, %v551_v58  ;;  %v553_v6 = vmul.f32 %v425_v54, %v297_v53  ;;  %v809_v11 = vmul.f32 2.0, %v425_v54  ;;  %v307_v49 = vld [vmem:[%s1582_s14 + $0x300] sm:$0xff]  ;;  %v436_v56 = vld [vmem:[%s1590_s26 + $0x308] sm:$0xff] }
  0x92   : > { %1059 = vst [vmem:[%s1617_s20 + $0x280] sm:$0xff] %v931_v55  ;;  %v934_v9 = vadd.f32 %v806_v57, %v678_v62  ;;  %v680_v10 = vadd.f32 4.0, %v552_v0  ;;  %v554_v12 = vmul.f32 %v426_v60, %v298_v59  ;;  %v810_v17 = vmul.f32 2.0, %v426_v60  ;;  %v308_v55 = vld [vmem:[%s1582_s14 + $0x308] sm:$0xff]  ;;  %v437_v62 = vld [vmem:[%s1590_s26 + $0x310] sm:$0xff] }
  0x93   : > { %1060 = vst [vmem:[%s1617_s20 + $0x288] sm:$0xff] %v932_v61  ;;  %v935_v15 = vadd.f32 %v807_v63, %v679_v4  ;;  %v681_v16 = vadd.f32 4.0, %v553_v6  ;;  %v555_v18 = vmul.f32 %v427_v2, %v299_v1  ;;  %v811_v23 = vmul.f32 2.0, %v427_v2  ;;  %v309_v61 = vld [vmem:[%s1582_s14 + $0x310] sm:$0xff]  ;;  %v438_v4 = vld [vmem:[%s1590_s26 + $0x318] sm:$0xff] }
  0x94   : > { %1061 = vst [vmem:[%s1617_s20 + $0x290] sm:$0xff] %v933_v3  ;;  %v936_v21 = vadd.f32 %v808_v5, %v680_v10  ;;  %v682_v22 = vadd.f32 4.0, %v554_v12  ;;  %v556_v24 = vmul.f32 %v428_v8, %v300_v7  ;;  %v812_v29 = vmul.f32 2.0, %v428_v8  ;;  %v310_v3 = vld [vmem:[%s1582_s14 + $0x318] sm:$0xff]  ;;  %v439_v10 = vld [vmem:[%s1590_s26 + $0x320] sm:$0xff] }
  0x95   : > { %1062 = vst [vmem:[%s1617_s20 + $0x298] sm:$0xff] %v934_v9  ;;  %v937_v27 = vadd.f32 %v809_v11, %v681_v16  ;;  %v683_v28 = vadd.f32 4.0, %v555_v18  ;;  %v557_v30 = vmul.f32 %v429_v14, %v301_v13  ;;  %v813_v35 = vmul.f32 2.0, %v429_v14  ;;  %v311_v9 = vld [vmem:[%s1582_s14 + $0x320] sm:$0xff]  ;;  %v440_v16 = vld [vmem:[%s1590_s26 + $0x328] sm:$0xff] }
  0x96   : > { %1063 = vst [vmem:[%s1617_s20 + $0x2a0] sm:$0xff] %v935_v15  ;;  %v938_v33 = vadd.f32 %v810_v17, %v682_v22  ;;  %v684_v34 = vadd.f32 4.0, %v556_v24  ;;  %v558_v36 = vmul.f32 %v430_v20, %v302_v19  ;;  %v814_v41 = vmul.f32 2.0, %v430_v20  ;;  %v312_v15 = vld [vmem:[%s1582_s14 + $0x328] sm:$0xff]  ;;  %v441_v22 = vld [vmem:[%s1590_s26 + $0x330] sm:$0xff] }
  0x97   : > { %1064 = vst [vmem:[%s1617_s20 + $0x2a8] sm:$0xff] %v936_v21  ;;  %v939_v39 = vadd.f32 %v811_v23, %v683_v28  ;;  %v685_v40 = vadd.f32 4.0, %v557_v30  ;;  %v559_v42 = vmul.f32 %v431_v26, %v303_v25  ;;  %v815_v47 = vmul.f32 2.0, %v431_v26  ;;  %v313_v21 = vld [vmem:[%s1582_s14 + $0x330] sm:$0xff]  ;;  %v442_v28 = vld [vmem:[%s1590_s26 + $0x338] sm:$0xff] }
  0x98   : > { %1065 = vst [vmem:[%s1617_s20 + $0x2b0] sm:$0xff] %v937_v27  ;;  %v940_v45 = vadd.f32 %v812_v29, %v684_v34  ;;  %v686_v46 = vadd.f32 4.0, %v558_v36  ;;  %v560_v48 = vmul.f32 %v432_v32, %v304_v31  ;;  %v816_v53 = vmul.f32 2.0, %v432_v32  ;;  %v314_v27 = vld [vmem:[%s1582_s14 + $0x338] sm:$0xff]  ;;  %v443_v34 = vld [vmem:[%s1590_s26 + $0x340] sm:$0xff] }
  0x99   : > { %1066 = vst [vmem:[%s1617_s20 + $0x2b8] sm:$0xff] %v938_v33  ;;  %v941_v51 = vadd.f32 %v813_v35, %v685_v40  ;;  %v687_v52 = vadd.f32 4.0, %v559_v42  ;;  %v561_v54 = vmul.f32 %v433_v38, %v305_v37  ;;  %v817_v59 = vmul.f32 2.0, %v433_v38  ;;  %v315_v33 = vld [vmem:[%s1582_s14 + $0x340] sm:$0xff]  ;;  %v444_v40 = vld [vmem:[%s1590_s26 + $0x348] sm:$0xff] }
  0x9a   : > { %1067 = vst [vmem:[%s1617_s20 + $0x2c0] sm:$0xff] %v939_v39  ;;  %v942_v57 = vadd.f32 %v814_v41, %v686_v46  ;;  %v688_v58 = vadd.f32 4.0, %v560_v48  ;;  %v562_v60 = vmul.f32 %v434_v44, %v306_v43  ;;  %v818_v1 = vmul.f32 2.0, %v434_v44  ;;  %v316_v39 = vld [vmem:[%s1582_s14 + $0x348] sm:$0xff]  ;;  %v445_v46 = vld [vmem:[%s1590_s26 + $0x350] sm:$0xff] }
  0x9b   : > { %1068 = vst [vmem:[%s1617_s20 + $0x2c8] sm:$0xff] %v940_v45  ;;  %v943_v63 = vadd.f32 %v815_v47, %v687_v52  ;;  %v689_v0 = vadd.f32 4.0, %v561_v54  ;;  %v563_v2 = vmul.f32 %v435_v50, %v307_v49  ;;  %v819_v7 = vmul.f32 2.0, %v435_v50  ;;  %v317_v45 = vld [vmem:[%s1582_s14 + $0x350] sm:$0xff]  ;;  %v446_v52 = vld [vmem:[%s1590_s26 + $0x358] sm:$0xff] }
  0x9c   : > { %1069 = vst [vmem:[%s1617_s20 + $0x2d0] sm:$0xff] %v941_v51  ;;  %v944_v5 = vadd.f32 %v816_v53, %v688_v58  ;;  %v690_v6 = vadd.f32 4.0, %v562_v60  ;;  %v564_v8 = vmul.f32 %v436_v56, %v308_v55  ;;  %v820_v13 = vmul.f32 2.0, %v436_v56  ;;  %v318_v51 = vld [vmem:[%s1582_s14 + $0x358] sm:$0xff]  ;;  %v447_v58 = vld [vmem:[%s1590_s26 + $0x360] sm:$0xff] }
  0x9d   : > { %1070 = vst [vmem:[%s1617_s20 + $0x2d8] sm:$0xff] %v942_v57  ;;  %v945_v11 = vadd.f32 %v817_v59, %v689_v0  ;;  %v691_v12 = vadd.f32 4.0, %v563_v2  ;;  %v565_v14 = vmul.f32 %v437_v62, %v309_v61  ;;  %v821_v19 = vmul.f32 2.0, %v437_v62  ;;  %v319_v57 = vld [vmem:[%s1582_s14 + $0x360] sm:$0xff]  ;;  %v448_v0 = vld [vmem:[%s1590_s26 + $0x368] sm:$0xff] }
  0x9e   : > { %1071 = vst [vmem:[%s1617_s20 + $0x2e0] sm:$0xff] %v943_v63  ;;  %v946_v17 = vadd.f32 %v818_v1, %v690_v6  ;;  %v692_v18 = vadd.f32 4.0, %v564_v8  ;;  %v566_v20 = vmul.f32 %v438_v4, %v310_v3  ;;  %v822_v25 = vmul.f32 2.0, %v438_v4  ;;  %v320_v63 = vld [vmem:[%s1582_s14 + $0x368] sm:$0xff]  ;;  %v449_v6 = vld [vmem:[%s1590_s26 + $0x370] sm:$0xff] }
  0x9f   : > { %1072 = vst [vmem:[%s1617_s20 + $0x2e8] sm:$0xff] %v944_v5  ;;  %v947_v23 = vadd.f32 %v819_v7, %v691_v12  ;;  %v693_v24 = vadd.f32 4.0, %v565_v14  ;;  %v567_v26 = vmul.f32 %v439_v10, %v311_v9  ;;  %v823_v31 = vmul.f32 2.0, %v439_v10  ;;  %v321_v5 = vld [vmem:[%s1582_s14 + $0x370] sm:$0xff]  ;;  %v450_v12 = vld [vmem:[%s1590_s26 + $0x378] sm:$0xff] }
  0xa0   : > { %1073 = vst [vmem:[%s1617_s20 + $0x2f0] sm:$0xff] %v945_v11  ;;  %v948_v29 = vadd.f32 %v820_v13, %v692_v18  ;;  %v694_v30 = vadd.f32 4.0, %v566_v20  ;;  %v568_v32 = vmul.f32 %v440_v16, %v312_v15  ;;  %v824_v37 = vmul.f32 2.0, %v440_v16  ;;  %v322_v11 = vld [vmem:[%s1582_s14 + $0x378] sm:$0xff]  ;;  %v451_v18 = vld [vmem:[%s1590_s26 + $0x380] sm:$0xff] }
  0xa1   : > { %1074 = vst [vmem:[%s1617_s20 + $0x2f8] sm:$0xff] %v946_v17  ;;  %v949_v35 = vadd.f32 %v821_v19, %v693_v24  ;;  %v695_v36 = vadd.f32 4.0, %v567_v26  ;;  %v569_v38 = vmul.f32 %v441_v22, %v313_v21  ;;  %v825_v43 = vmul.f32 2.0, %v441_v22  ;;  %v323_v17 = vld [vmem:[%s1582_s14 + $0x380] sm:$0xff]  ;;  %v452_v24 = vld [vmem:[%s1590_s26 + $0x388] sm:$0xff] }
  0xa2   : > { %1075 = vst [vmem:[%s1617_s20 + $0x300] sm:$0xff] %v947_v23  ;;  %v950_v41 = vadd.f32 %v822_v25, %v694_v30  ;;  %v696_v42 = vadd.f32 4.0, %v568_v32  ;;  %v570_v44 = vmul.f32 %v442_v28, %v314_v27  ;;  %v826_v49 = vmul.f32 2.0, %v442_v28  ;;  %v324_v23 = vld [vmem:[%s1582_s14 + $0x388] sm:$0xff]  ;;  %v453_v30 = vld [vmem:[%s1590_s26 + $0x390] sm:$0xff] }
  0xa3   : > { %1076 = vst [vmem:[%s1617_s20 + $0x308] sm:$0xff] %v948_v29  ;;  %v951_v47 = vadd.f32 %v823_v31, %v695_v36  ;;  %v697_v48 = vadd.f32 4.0, %v569_v38  ;;  %v571_v50 = vmul.f32 %v443_v34, %v315_v33  ;;  %v827_v55 = vmul.f32 2.0, %v443_v34  ;;  %v325_v29 = vld [vmem:[%s1582_s14 + $0x390] sm:$0xff]  ;;  %v454_v36 = vld [vmem:[%s1590_s26 + $0x398] sm:$0xff] }
  0xa4   : > { %1077 = vst [vmem:[%s1617_s20 + $0x310] sm:$0xff] %v949_v35  ;;  %v952_v53 = vadd.f32 %v824_v37, %v696_v42  ;;  %v698_v54 = vadd.f32 4.0, %v570_v44  ;;  %v572_v56 = vmul.f32 %v444_v40, %v316_v39  ;;  %v828_v61 = vmul.f32 2.0, %v444_v40  ;;  %v326_v35 = vld [vmem:[%s1582_s14 + $0x398] sm:$0xff]  ;;  %v455_v42 = vld [vmem:[%s1590_s26 + $0x3a0] sm:$0xff] }
  0xa5   : > { %1078 = vst [vmem:[%s1617_s20 + $0x318] sm:$0xff] %v950_v41  ;;  %v953_v59 = vadd.f32 %v825_v43, %v697_v48  ;;  %v699_v60 = vadd.f32 4.0, %v571_v50  ;;  %v573_v62 = vmul.f32 %v445_v46, %v317_v45  ;;  %v829_v3 = vmul.f32 2.0, %v445_v46  ;;  %v327_v41 = vld [vmem:[%s1582_s14 + $0x3a0] sm:$0xff]  ;;  %v456_v48 = vld [vmem:[%s1590_s26 + $0x3a8] sm:$0xff] }
  0xa6   : > { %1079 = vst [vmem:[%s1617_s20 + $0x320] sm:$0xff] %v951_v47  ;;  %v954_v1 = vadd.f32 %v826_v49, %v698_v54  ;;  %v700_v2 = vadd.f32 4.0, %v572_v56  ;;  %v574_v4 = vmul.f32 %v446_v52, %v318_v51  ;;  %v830_v9 = vmul.f32 2.0, %v446_v52  ;;  %v328_v47 = vld [vmem:[%s1582_s14 + $0x3a8] sm:$0xff]  ;;  %v457_v54 = vld [vmem:[%s1590_s26 + $0x3b0] sm:$0xff] }
  0xa7   : > { %1080 = vst [vmem:[%s1617_s20 + $0x328] sm:$0xff] %v952_v53  ;;  %v955_v7 = vadd.f32 %v827_v55, %v699_v60  ;;  %v701_v8 = vadd.f32 4.0, %v573_v62  ;;  %v575_v10 = vmul.f32 %v447_v58, %v319_v57  ;;  %v831_v15 = vmul.f32 2.0, %v447_v58  ;;  %v329_v53 = vld [vmem:[%s1582_s14 + $0x3b0] sm:$0xff]  ;;  %v458_v60 = vld [vmem:[%s1590_s26 + $0x3b8] sm:$0xff] }
  0xa8   : > { %1081 = vst [vmem:[%s1617_s20 + $0x330] sm:$0xff] %v953_v59  ;;  %v956_v13 = vadd.f32 %v828_v61, %v700_v2  ;;  %v702_v14 = vadd.f32 4.0, %v574_v4  ;;  %v576_v16 = vmul.f32 %v448_v0, %v320_v63  ;;  %v832_v21 = vmul.f32 2.0, %v448_v0  ;;  %v330_v59 = vld [vmem:[%s1582_s14 + $0x3b8] sm:$0xff]  ;;  %v459_v2 = vld [vmem:[%s1590_s26 + $0x3c0] sm:$0xff] }
  0xa9   : > { %1082 = vst [vmem:[%s1617_s20 + $0x338] sm:$0xff] %v954_v1  ;;  %v957_v19 = vadd.f32 %v829_v3, %v701_v8  ;;  %v703_v20 = vadd.f32 4.0, %v575_v10  ;;  %v577_v22 = vmul.f32 %v449_v6, %v321_v5  ;;  %v833_v27 = vmul.f32 2.0, %v449_v6  ;;  %v331_v1 = vld [vmem:[%s1582_s14 + $0x3c0] sm:$0xff]  ;;  %v460_v8 = vld [vmem:[%s1590_s26 + $0x3c8] sm:$0xff] }
  0xaa   : > { %1083 = vst [vmem:[%s1617_s20 + $0x340] sm:$0xff] %v955_v7  ;;  %v958_v25 = vadd.f32 %v830_v9, %v702_v14  ;;  %v704_v26 = vadd.f32 4.0, %v576_v16  ;;  %v578_v28 = vmul.f32 %v450_v12, %v322_v11  ;;  %v834_v33 = vmul.f32 2.0, %v450_v12  ;;  %v332_v7 = vld [vmem:[%s1582_s14 + $0x3c8] sm:$0xff]  ;;  %v461_v14 = vld [vmem:[%s1590_s26 + $0x3d0] sm:$0xff] }
  0xab   : > { %1084 = vst [vmem:[%s1617_s20 + $0x348] sm:$0xff] %v956_v13  ;;  %v959_v31 = vadd.f32 %v831_v15, %v703_v20  ;;  %v705_v32 = vadd.f32 4.0, %v577_v22  ;;  %v579_v34 = vmul.f32 %v451_v18, %v323_v17  ;;  %v835_v39 = vmul.f32 2.0, %v451_v18  ;;  %v333_v13 = vld [vmem:[%s1582_s14 + $0x3d0] sm:$0xff]  ;;  %v462_v20 = vld [vmem:[%s1590_s26 + $0x3d8] sm:$0xff] }
  0xac   : > { %1085 = vst [vmem:[%s1617_s20 + $0x350] sm:$0xff] %v957_v19  ;;  %v960_v37 = vadd.f32 %v832_v21, %v704_v26  ;;  %v706_v38 = vadd.f32 4.0, %v578_v28  ;;  %v580_v40 = vmul.f32 %v452_v24, %v324_v23  ;;  %v836_v45 = vmul.f32 2.0, %v452_v24  ;;  %v334_v19 = vld [vmem:[%s1582_s14 + $0x3d8] sm:$0xff]  ;;  %v463_v26 = vld [vmem:[%s1590_s26 + $0x3e0] sm:$0xff] }
  0xad   : > { %1086 = vst [vmem:[%s1617_s20 + $0x358] sm:$0xff] %v958_v25  ;;  %v961_v43 = vadd.f32 %v833_v27, %v705_v32  ;;  %v707_v44 = vadd.f32 4.0, %v579_v34  ;;  %v581_v46 = vmul.f32 %v453_v30, %v325_v29  ;;  %v837_v51 = vmul.f32 2.0, %v453_v30  ;;  %v335_v25 = vld [vmem:[%s1582_s14 + $0x3e0] sm:$0xff]  ;;  %v464_v32 = vld [vmem:[%s1590_s26 + $0x3e8] sm:$0xff] }
  0xae   : > { %1087 = vst [vmem:[%s1617_s20 + $0x360] sm:$0xff] %v959_v31  ;;  %v962_v49 = vadd.f32 %v834_v33, %v706_v38  ;;  %v708_v50 = vadd.f32 4.0, %v580_v40  ;;  %v582_v52 = vmul.f32 %v454_v36, %v326_v35  ;;  %v838_v57 = vmul.f32 2.0, %v454_v36  ;;  %v336_v31 = vld [vmem:[%s1582_s14 + $0x3e8] sm:$0xff]  ;;  %v465_v38 = vld [vmem:[%s1590_s26 + $0x3f0] sm:$0xff] }
  0xaf   : > { %1088 = vst [vmem:[%s1617_s20 + $0x368] sm:$0xff] %v960_v37  ;;  %v963_v55 = vadd.f32 %v835_v39, %v707_v44  ;;  %v709_v56 = vadd.f32 4.0, %v581_v46  ;;  %v583_v58 = vmul.f32 %v455_v42, %v327_v41  ;;  %v839_v63 = vmul.f32 2.0, %v455_v42  ;;  %v337_v37 = vld [vmem:[%s1582_s14 + $0x3f0] sm:$0xff]  ;;  %v466_v44 = vld [vmem:[%s1590_s26 + $0x3f8] sm:$0xff] }
  0xb0   : > { %1089 = vst [vmem:[%s1617_s20 + $0x370] sm:$0xff] %v961_v43  ;;  %v964_v61 = vadd.f32 %v836_v45, %v708_v50  ;;  %v710_v62 = vadd.f32 4.0, %v582_v52  ;;  %v584_v0 = vmul.f32 %v456_v48, %v328_v47  ;;  %v840_v5 = vmul.f32 2.0, %v456_v48  ;;  %v338_v43 = vld [vmem:[%s1582_s14 + $0x3f8] sm:$0xff] }
  0xb1   : > { %1090 = vst [vmem:[%s1617_s20 + $0x378] sm:$0xff] %v962_v49  ;;  %v965_v3 = vadd.f32 %v837_v51, %v709_v56  ;;  %v711_v4 = vadd.f32 4.0, %v583_v58  ;;  %v585_v6 = vmul.f32 %v457_v54, %v329_v53  ;;  %v841_v11 = vmul.f32 2.0, %v457_v54 }
  0xb2   : > { %1091 = vst [vmem:[%s1617_s20 + $0x380] sm:$0xff] %v963_v55  ;;  %v966_v9 = vadd.f32 %v838_v57, %v710_v62  ;;  %v712_v10 = vadd.f32 4.0, %v584_v0  ;;  %v586_v12 = vmul.f32 %v458_v60, %v330_v59  ;;  %v842_v17 = vmul.f32 2.0, %v458_v60 }
  0xb3   : > { %1092 = vst [vmem:[%s1617_s20 + $0x388] sm:$0xff] %v964_v61  ;;  %v967_v15 = vadd.f32 %v839_v63, %v711_v4  ;;  %v713_v16 = vadd.f32 4.0, %v585_v6  ;;  %v587_v18 = vmul.f32 %v459_v2, %v331_v1  ;;  %v843_v23 = vmul.f32 2.0, %v459_v2 }
  0xb4   : > { %1093 = vst [vmem:[%s1617_s20 + $0x390] sm:$0xff] %v965_v3  ;;  %v968_v21 = vadd.f32 %v840_v5, %v712_v10  ;;  %v714_v22 = vadd.f32 4.0, %v586_v12  ;;  %v588_v24 = vmul.f32 %v460_v8, %v332_v7  ;;  %v844_v29 = vmul.f32 2.0, %v460_v8 }
  0xb5   : > { %1094 = vst [vmem:[%s1617_s20 + $0x398] sm:$0xff] %v966_v9  ;;  %v969_v27 = vadd.f32 %v841_v11, %v713_v16  ;;  %v715_v28 = vadd.f32 4.0, %v587_v18  ;;  %v589_v30 = vmul.f32 %v461_v14, %v333_v13  ;;  %v845_v35 = vmul.f32 2.0, %v461_v14 }
  0xb6   : > { %1095 = vst [vmem:[%s1617_s20 + $0x3a0] sm:$0xff] %v967_v15  ;;  %v970_v33 = vadd.f32 %v842_v17, %v714_v22  ;;  %v716_v34 = vadd.f32 4.0, %v588_v24  ;;  %v590_v36 = vmul.f32 %v462_v20, %v334_v19  ;;  %v846_v41 = vmul.f32 2.0, %v462_v20 }
  0xb7   : > { %1096 = vst [vmem:[%s1617_s20 + $0x3a8] sm:$0xff] %v968_v21  ;;  %v971_v39 = vadd.f32 %v843_v23, %v715_v28  ;;  %v717_v40 = vadd.f32 4.0, %v589_v30  ;;  %v591_v42 = vmul.f32 %v463_v26, %v335_v25  ;;  %v847_v47 = vmul.f32 2.0, %v463_v26 }
  0xb8   : > { %1097 = vst [vmem:[%s1617_s20 + $0x3b0] sm:$0xff] %v969_v27  ;;  %v972_v45 = vadd.f32 %v844_v29, %v716_v34  ;;  %v718_v46 = vadd.f32 4.0, %v590_v36  ;;  %v592_v48 = vmul.f32 %v464_v32, %v336_v31  ;;  %v848_v51 = vmul.f32 2.0, %v464_v32 }
  0xb9   : > { %1098 = vst [vmem:[%s1617_s20 + $0x3b8] sm:$0xff] %v970_v33  ;;  %v973_v49 = vadd.f32 %v845_v35, %v717_v40  ;;  %v719_v50 = vadd.f32 4.0, %v591_v42  ;;  %v593_v52 = vmul.f32 %v465_v38, %v337_v37  ;;  %v849_v55 = vmul.f32 2.0, %v465_v38 }
  0xba   : > { %1099 = vst [vmem:[%s1617_s20 + $0x3c0] sm:$0xff] %v971_v39  ;;  %v974_v53 = vadd.f32 %v846_v41, %v718_v46  ;;  %v720_v54 = vadd.f32 4.0, %v592_v48  ;;  %v594_v56 = vmul.f32 %v466_v44, %v338_v43  ;;  %v850_v59 = vmul.f32 2.0, %v466_v44 }
  0xbb   : > { %1100 = vst [vmem:[%s1617_s20 + $0x3c8] sm:$0xff] %v972_v45  ;;  %v975_v57 = vadd.f32 %v847_v47, %v719_v50  ;;  %v721_v58 = vadd.f32 4.0, %v593_v52 }
  0xbc   : > { %1101 = vst [vmem:[%s1617_s20 + $0x3d0] sm:$0xff] %v973_v49  ;;  %v976_v60 = vadd.f32 %v848_v51, %v720_v54  ;;  %v722_v61 = vadd.f32 4.0, %v594_v56 }
  0xbd   : > { %1102 = vst [vmem:[%s1617_s20 + $0x3d8] sm:$0xff] %v974_v53  ;;  %v977_v62 = vadd.f32 %v849_v55, %v721_v58 }
  0xbe   : > { %1103 = vst [vmem:[%s1617_s20 + $0x3e0] sm:$0xff] %v975_v57  ;;  %v978_v63 = vadd.f32 %v850_v59, %v722_v61 }
  0xbf   : > { %1104 = vst [vmem:[%s1617_s20 + $0x3e8] sm:$0xff] %v976_v60 }
  0xc0   : > { %1105 = vst [vmem:[%s1617_s20 + $0x3f0] sm:$0xff] %v977_v62 }
  0xc1   : > { %1106 = vst [vmem:[%s1617_s20 + $0x3f8] sm:$0xff] %v978_v63 }
  0xc2   : > { %1389 = shalt.err (!%p1386_p0)
}
  0xc3   : > { %s1436_s23 = smov 1024   ;;  %s1437_s7 = smov 64  }
  0xc4   : > { %1251 = dma.vmem_to_hbm [thread:$0]  (%p1503_p11), %s1122_s16, 16384, %s1124_s17, %s1108_s19, %s1436_s23, %s1436_s23, %s1437_s7  }
  0xc5 PF: > { %s1138_s14 = sand.u32 1, %s1420_s9   ;;  %p2026_p1 = scmp.ge.s32.totalorder %s1432_s12, 2 }
  0xc6   : > { %s1139_s4 = scalar_lea.sflag [#allocation4], %s1138_s14 }
  0xc7   : > { %p1261_p4 = pnand %p2026_p1, %p1507_p12 }
  0xc9   : > { %p1262_p7 = pneg %p1261_p4 }
  0xcb   : > { %1415 = dma.done.wait (%p1262_p7), %s1139_s4, 16384  }
  0xcc   : > { %1417 = vsyncadd (%p1262_p7), %s1139_s4, 4294950912  ;;  %p18_p5 = scmp.ge.s32.totalorder %s1478_s15, 4   ;;  %s2027_s9 = smov %s1424_s10 }
  0xcd   : > { %s2028_s10 = smov %s1428_s11  ;;  %s2029_s11 = smov %s1490_s18 }
  0xce   : > { %s2030_s12 = smov %s1478_s15  ;;  %20 = sbr.rel (!%p18_p5) target bundleno = 7 (0x7), region = 86 }
  0xd3   :  { %1145 = vsyncpa [#allocation3], 1 }
  0xd4   :  { %1147 = vsyncpa [#allocation3 + $0x1], 1 }
  0xd5   :  { %1148 = vsyncpa [#allocation6], 1 }
  0xd6   :  { %1150 = vsyncpa [#allocation6 + $0x1], 1 }
  0xd7   :  { %1151 = vsyncpa [#allocation4], 1 }
  0xd8   :  { %1153 = vsyncpa [#allocation4 + $0x1], 1 }

</bundles_post_ra>
